<compile_context>
chip_gen: v5e
topology: v5e:2x2
jax: 0.10.0
libtpu: 0.0.40
codegen_flags: <defaults>
</compile_context>

<pallas_src>
import math
from functools import partial

import jax
import jax.numpy as jnp
from jax.experimental import pallas as pl
from jax.experimental.pallas import tpu as pltpu


QPAD = 128          # lane-tile width each Q/K/V block is padded to
LN_EPS = 1e-5       # nn.LayerNorm default
BN_EPS = 1e-4       # BatchNorm2d(eps=0.0001) in the reference module


# ----------------------------- in-kernel helpers -----------------------------

def _bf16_dot(a, b):
    # MXU-friendly matmul: bf16 operands, f32 accumulation.
    return jnp.dot(a.astype(jnp.bfloat16), b.astype(jnp.bfloat16),
                   preferred_element_type=jnp.float32)


def _gelu_tanh(x):
    # tanh-formulation GELU (runs on the EUP); ~3e-4 abs deviation from nn.GELU()'s erf.
    c = math.sqrt(2.0 / math.pi)
    return 0.5 * x * (1.0 + jnp.tanh(c * (x + 0.044715 * x * x * x)))


def _layernorm(x, g, b, eps=LN_EPS):
    mu = jnp.mean(x, axis=-1, keepdims=True)
    var = jnp.mean((x - mu) ** 2, axis=-1, keepdims=True)
    return (x - mu) * jax.lax.rsqrt(var + eps) * g + b


# --------------------------------- kernel ------------------------------------

def _block_kernel(B, H, E, N,
                  patches_ref, addend_ref, pe_w_ref,
                  ln1g_ref, ln1b_ref,
                  wqkv_ref, bqkv_ref, mask_ref,
                  ow_ref, ob_ref, aavg_ref,
                  ln2g_ref, ln2b_ref,
                  w1_ref, b1_ref, w2_ref, b2_ref,
                  convw_ref, bng_ref, bnb_ref,
                  o_ref):
    EH = E * H
    bf16 = jnp.bfloat16
    f32 = jnp.float32

    # --- PatchEmbedding: stride==kernel conv as one GEMM + bias + positions ---
    x = _bf16_dot(patches_ref[...], pe_w_ref[...]) + addend_ref[...]          # (B*N, E)

    # --- SpecialResidualAdd( LayerNorm -> MultiHeadAttention ) ---
    xn = _layernorm(x, ln1g_ref[...], ln1b_ref[...])

    # folded (outer Linear ∘ MHA in-proj) Q/K/V; 1/sqrt(EH) folded into Q; 128-lane-padded blocks
    qkv = _bf16_dot(xn, wqkv_ref[...]) + bqkv_ref[...]                        # (B*N, 3*128)
    q = qkv[:, 0 * QPAD:1 * QPAD]
    k = qkv[:, 1 * QPAD:2 * QPAD]
    v = qkv[:, 2 * QPAD:3 * QPAD]

    # flat single-head attention over all B*N rows; block-diagonal mask keeps batches apart
    s = jax.lax.dot_general(q.astype(bf16), k.astype(bf16),
                            (((1,), (1,)), ((), ())),
                            preferred_element_type=f32) + mask_ref[...]       # (B*N, B*N)
    s = s - jnp.max(s, axis=-1, keepdims=True)
    p = jnp.exp(s)
    p = p * pl.reciprocal(jnp.sum(p, axis=-1, keepdims=True), approx=True)
    ctx = _bf16_dot(p, v)                                                     # (B*N, 128)

    # out-projection (zero rows absorb the lane padding exactly); lane-concat raw-token residual
    att = _bf16_dot(ctx, ow_ref[...]) + ob_ref[...]                           # (B*N, EH)
    h1 = att + jnp.concatenate([x] * H, axis=-1)                              # (B*N, EH)

    # --- ResidualAdd( per-head LayerNorm -> FeedForward(GELU) ) ---
    # grouped (per E-wide head slot) LayerNorm stats via explicit-bf16 block-averaging matmuls
    mu = _bf16_dot(h1, aavg_ref[...])
    d = h1 - mu
    var = _bf16_dot(d * d, aavg_ref[...])
    hn = d * jax.lax.rsqrt(var + LN_EPS) * ln2g_ref[...] + ln2b_ref[...]

    # block-diagonal FFN keeps the lane-dense (B*N, EH) layout
    f = _bf16_dot(hn, w1_ref[...]) + b1_ref[...]                              # (B*N, 4*EH)
    f = _gelu_tanh(f)
    f = _bf16_dot(f, w2_ref[...]) + b2_ref[...]                               # (B*N, EH)
    h2 = f + h1

    # --- fused 1x1 conv (channel mix) + training-mode BatchNorm2d + ReLU ---
    # conv bias dropped: a per-channel constant is cancelled exactly by the BN batch-mean.
    y = _bf16_dot(h2, convw_ref[...])                                         # (B*N, EH)
    ym = _bf16_dot(y, aavg_ref[...])                                          # per-row channel-block mean
    cmu = jnp.mean(ym, axis=0, keepdims=True)                                 # per-channel batch mean (1, EH)
    dy = y - cmu
    dv = _bf16_dot(dy * dy, aavg_ref[...])
    cvar = jnp.mean(dv, axis=0, keepdims=True)                                # biased batch variance (1, EH)
    yn = dy * jax.lax.rsqrt(cvar + BN_EPS) * bng_ref[...] + bnb_ref[...]
    out = jnp.maximum(yn, 0.0)                                                # (B*N, EH)

    # pad to a full 128-lane tile -> unmasked stores; jitted wrapper slices [:, :EH]
    o_ref[...] = jnp.concatenate([out, jnp.zeros((B * N, QPAD - EH), out.dtype)], axis=-1)


# ------------------------------ pallas wrapper --------------------------------

def _full_spec(shape):
    return pl.BlockSpec(shape, lambda *_, s=shape: (0,) * len(s))


def fused_transformer_block_core(patches, addend, mask, p, B, H, E, N):
    EH = E * H
    args = (patches, addend, p["pe_w"],
            p["ln1g"], p["ln1b"],
            p["w_qkv"], p["b_qkv"], mask,
            p["ow"], p["ob"], p["aavg"],
            p["ln2g_f"], p["ln2b_f"],
            p["w1_bd"], p["b1_f"], p["w2_bd"], p["b2_f"],
            p["conv_w"], p["bn_g_f"], p["bn_b_f"])
    # Whole batch folded into one grid step (best on single-TC v5e/v6e at these tiny shapes;
    # all GEMMs are launch/drain-latency bound, so more rows per launch beats more steps).
    # TODO(synk): on v7x add a per-batch "parallel" grid axis (attention is per-batch once the
    # mask is dropped) so both TensorCores are used when the batch grows.
    out = pl.pallas_call(
        partial(_block_kernel, B, H, E, N),
        out_shape=jax.ShapeDtypeStruct((B * N, QPAD), jnp.float32),
        grid=(1,),
        in_specs=[_full_spec(a.shape) for a in args],
        out_specs=_full_spec((B * N, QPAD)),
        compiler_params=pltpu.CompilerParams(dimension_semantics=("arbitrary",)),
    )(*args)
    return out[:, :EH]


# --------------------------------- glue (JAX) ---------------------------------

def transformer_block(x, params, img_size, patch, out_ch):
    B, C, _, _ = x.shape
    p = patch
    n = img_size // p
    N = n * n
    E = p * p
    H = out_ch

    # patch extraction: feature order (c, si, pj) matches the flattened conv weight
    patches = (x.reshape(B, C, n, p, n, p)
                 .transpose(0, 2, 4, 1, 3, 5)
                 .reshape(B * N, C * E))
    addend = jnp.tile(params["pos"], (B, 1)) + params["pe_b"]                 # (B*N, E)

    # block-diagonal additive mask so the flat attention stays per-batch (constant under jit)
    bidx = jnp.arange(B * N, dtype=jnp.int32) // N
    mask = jnp.where(bidx[:, None] == bidx[None, :], 0.0, -1e30).astype(jnp.float32)

    tok = fused_transformer_block_core(patches, addend, mask, params, B, H, E, N)

    # rearrange 'b h (n o) (s p) -> b h (n s) (o p)'
    return (tok.reshape(B, n, n, H, p, p)
               .transpose(0, 3, 1, 4, 2, 5)
               .reshape(B, H, img_size, img_size))


@partial(jax.jit, static_argnames=("img_size", "patch", "channel2"))
def transformer_stack_encoder(x, params, img_size, patch, channel2):
    big_out = transformer_block(x, params, img_size, patch, channel2)
    B, C, Hh, Ww = big_out.shape
    poolout = big_out.reshape(B, C, Hh // 2, 2, Ww // 2, 2).max(axis=(3, 5))  # MaxPool2d(2,2)
    return big_out, poolout


# ------------------------------ parameter setup -------------------------------

def make_block_params(key, c_in, out_ch, img_size, patch):
    E = patch * patch
    H = out_ch
    EH = E * H
    n = img_size // patch
    N = n * n
    ks = jax.random.split(key, 32)
    bf16 = jnp.bfloat16

    def w(i, shape, scale=0.05):
        return jax.random.normal(ks[i], shape, jnp.float32) * scale

    P = {}
    # PatchEmbedding conv weight pre-flattened/transposed: (C_in*p*p, E); bf16 for the MXU.
    P["pe_w"] = w(0, (c_in * E, E)).astype(bf16)
    P["pe_b"] = w(1, (1, E), 0.02)
    P["pos"] = w(2, (N, E), 0.02)

    # raw encoder weights, (in, out) layout
    P["ln1g"] = 1.0 + w(3, (1, E), 0.02)
    P["ln1b"] = w(4, (1, E), 0.02)
    wq, bq = w(5, (E, EH)), w(6, (1, EH), 0.02)
    wk, bk = w(7, (E, EH)), w(8, (1, EH), 0.02)
    wv, bv = w(9, (E, EH)), w(10, (1, EH), 0.02)
    iqw, iqb = w(11, (EH, EH)), w(12, (1, EH), 0.02)   # MHA in-proj q
    ikw, ikb = w(13, (EH, EH)), w(14, (1, EH), 0.02)   # MHA in-proj k
    ivw, ivb = w(15, (EH, EH)), w(16, (1, EH), 0.02)   # MHA in-proj v
    ow, ob = w(17, (EH, EH)), w(18, (1, EH), 0.02)     # MHA out-proj
    ln2g = 1.0 + w(19, (1, E), 0.02)
    ln2b = w(20, (1, E), 0.02)
    w1, b1 = w(21, (E, 4 * E)), w(22, (1, 4 * E), 0.02)
    w2, b2 = w(23, (4 * E, E)), w(24, (1, E), 0.02)
    dc_w = w(25, (H, H))                               # 1x1 conv weight (out, in)
    # dc_b dropped: a per-channel constant conv bias is cancelled exactly by the
    # training-mode BatchNorm mean subtraction that follows it.
    bn_g = 1.0 + w(27, (H, 1), 0.02)
    bn_b = w(28, (H, 1), 0.02)

    # ---- one-time algebraic folds (done at parameter-setup time) ----
    scale = 1.0 / math.sqrt(EH)
    wq_f, bq_f = (wq @ iqw) * scale, (bq @ iqw + iqb) * scale   # Linear ∘ in-proj, scale folded
    wk_f, bk_f = wk @ ikw, bk @ ikw + ikb
    wv_f, bv_f = wv @ ivw, bv @ ivw + ivb

    def pad_cols(m, width):
        return jnp.concatenate(
            [m, jnp.zeros((m.shape[0], width - m.shape[1]), m.dtype)], axis=1)

    # each Q/K/V block zero-padded to a 128-lane tile -> tile-aligned in-kernel slices (exact)
    P["w_qkv"] = jnp.concatenate([pad_cols(wq_f, QPAD), pad_cols(wk_f, QPAD),
                                  pad_cols(wv_f, QPAD)], axis=1).astype(bf16)   # (E, 3*128)
    P["b_qkv"] = jnp.concatenate([pad_cols(bq_f, QPAD), pad_cols(bk_f, QPAD),
                                  pad_cols(bv_f, QPAD)], axis=1)                # (1, 3*128)
    # out-projection with zero rows for the padded ctx lanes
    P["ow"] = jnp.concatenate(
        [ow, jnp.zeros((QPAD - EH, EH), jnp.float32)], axis=0).astype(bf16)     # (128, EH)
    P["ob"] = ob

    eye_h = jnp.eye(H, dtype=jnp.float32)
    eye_e = jnp.eye(E, dtype=jnp.float32)
    P["aavg"] = jnp.kron(eye_h, jnp.ones((E, E), jnp.float32) / E).astype(bf16)  # (EH, EH) block avg
    P["ln2g_f"] = jnp.tile(ln2g, (1, H))
    P["ln2b_f"] = jnp.tile(ln2b, (1, H))
    P["w1_bd"] = jnp.kron(eye_h, w1).astype(bf16)      # (EH, 4*EH) block-diag FFN
    P["b1_f"] = jnp.tile(b1, (1, H))
    P["w2_bd"] = jnp.kron(eye_h, w2).astype(bf16)      # (4*EH, EH)
    P["b2_f"] = jnp.tile(b2, (1, H))

    # token-layout 1x1 conv + BN params
    P["conv_w"] = jnp.kron(dc_w.T, eye_e).astype(bf16)             # (EH, EH) channel mix
    P["bn_g_f"] = jnp.repeat(bn_g.reshape(-1), E).reshape(1, EH)   # per-channel gamma, per-column
    P["bn_b_f"] = jnp.repeat(bn_b.reshape(-1), E).reshape(1, EH)   # per-channel beta, per-column
    return P


# ------------------------------------ main ------------------------------------

if __name__ == "__main__":
    channel1, channel2 = 4, 4
    img_size, patch = 16, 4
    B = 2

    key = jax.random.PRNGKey(0)
    kp, kx = jax.random.split(key)
    params = make_block_params(kp, channel1, channel2, img_size, patch)
    x = jax.random.normal(kx, (B, channel1, img_size, img_size), jnp.float32)

    big_out, poolout = transformer_stack_encoder(x, params, img_size, patch, channel2)
    big_out, poolout = jax.block_until_ready((big_out, poolout))

    assert big_out.shape == (B, channel2, img_size, img_size)
    assert poolout.shape == (B, channel2, img_size // 2, img_size // 2)
    assert bool(jnp.all(jnp.isfinite(big_out))) and bool(jnp.all(jnp.isfinite(poolout)))
    print("KERNEL_OK")
</pallas_src>

<mosaic_0001>
module attributes {stable_mosaic.version = 11 : i64} {
  func.func @_block_kernel(%arg0: i32, %arg1: memref<32x64xf32, #tpu.memory_space<vmem>>, %arg2: memref<32x16xf32, #tpu.memory_space<vmem>>, %arg3: memref<64x16xbf16, #tpu.memory_space<vmem>>, %arg4: memref<1x16xf32, #tpu.memory_space<vmem>>, %arg5: memref<1x16xf32, #tpu.memory_space<vmem>>, %arg6: memref<16x384xbf16, #tpu.memory_space<vmem>>, %arg7: memref<1x384xf32, #tpu.memory_space<vmem>>, %arg8: memref<32x32xf32, #tpu.memory_space<vmem>>, %arg9: memref<128x64xbf16, #tpu.memory_space<vmem>>, %arg10: memref<1x64xf32, #tpu.memory_space<vmem>>, %arg11: memref<64x64xbf16, #tpu.memory_space<vmem>>, %arg12: memref<1x64xf32, #tpu.memory_space<vmem>>, %arg13: memref<1x64xf32, #tpu.memory_space<vmem>>, %arg14: memref<64x256xbf16, #tpu.memory_space<vmem>>, %arg15: memref<1x256xf32, #tpu.memory_space<vmem>>, %arg16: memref<256x64xbf16, #tpu.memory_space<vmem>>, %arg17: memref<1x64xf32, #tpu.memory_space<vmem>>, %arg18: memref<64x64xbf16, #tpu.memory_space<vmem>>, %arg19: memref<1x64xf32, #tpu.memory_space<vmem>>, %arg20: memref<1x64xf32, #tpu.memory_space<vmem>>, %arg21: memref<32x128xf32, #tpu.memory_space<vmem>>) attributes {dimension_semantics = [#tpu.dimension_semantics<arbitrary>], iteration_bounds = array<i64: 1>, scalar_prefetch = 0 : i64, scratch_operands = 0 : i64, tpu.core_type = #tpu.core_type<tc>, window_params = [{pipeline_mode = #tpu.pipeline_mode<synchronous>, transform_indices = @transform_0, window_bounds = array<i64: 32, 64>}, {pipeline_mode = #tpu.pipeline_mode<synchronous>, transform_indices = @transform_1, window_bounds = array<i64: 32, 16>}, {pipeline_mode = #tpu.pipeline_mode<synchronous>, transform_indices = @transform_2, window_bounds = array<i64: 64, 16>}, {pipeline_mode = #tpu.pipeline_mode<synchronous>, transform_indices = @transform_3, window_bounds = array<i64: 1, 16>}, {pipeline_mode = #tpu.pipeline_mode<synchronous>, transform_indices = @transform_4, window_bounds = array<i64: 1, 16>}, {pipeline_mode = #tpu.pipeline_mode<synchronous>, transform_indices = @transform_5, window_bounds = array<i64: 16, 384>}, {pipeline_mode = #tpu.pipeline_mode<synchronous>, transform_indices = @transform_6, window_bounds = array<i64: 1, 384>}, {pipeline_mode = #tpu.pipeline_mode<synchronous>, transform_indices = @transform_7, window_bounds = array<i64: 32, 32>}, {pipeline_mode = #tpu.pipeline_mode<synchronous>, transform_indices = @transform_8, window_bounds = array<i64: 128, 64>}, {pipeline_mode = #tpu.pipeline_mode<synchronous>, transform_indices = @transform_9, window_bounds = array<i64: 1, 64>}, {pipeline_mode = #tpu.pipeline_mode<synchronous>, transform_indices = @transform_10, window_bounds = array<i64: 64, 64>}, {pipeline_mode = #tpu.pipeline_mode<synchronous>, transform_indices = @transform_11, window_bounds = array<i64: 1, 64>}, {pipeline_mode = #tpu.pipeline_mode<synchronous>, transform_indices = @transform_12, window_bounds = array<i64: 1, 64>}, {pipeline_mode = #tpu.pipeline_mode<synchronous>, transform_indices = @transform_13, window_bounds = array<i64: 64, 256>}, {pipeline_mode = #tpu.pipeline_mode<synchronous>, transform_indices = @transform_14, window_bounds = array<i64: 1, 256>}, {pipeline_mode = #tpu.pipeline_mode<synchronous>, transform_indices = @transform_15, window_bounds = array<i64: 256, 64>}, {pipeline_mode = #tpu.pipeline_mode<synchronous>, transform_indices = @transform_16, window_bounds = array<i64: 1, 64>}, {pipeline_mode = #tpu.pipeline_mode<synchronous>, transform_indices = @transform_17, window_bounds = array<i64: 64, 64>}, {pipeline_mode = #tpu.pipeline_mode<synchronous>, transform_indices = @transform_18, window_bounds = array<i64: 1, 64>}, {pipeline_mode = #tpu.pipeline_mode<synchronous>, transform_indices = @transform_19, window_bounds = array<i64: 1, 64>}, {pipeline_mode = #tpu.pipeline_mode<synchronous>, transform_indices = @transform_20, window_bounds = array<i64: 32, 128>}]} {
    %c0 = arith.constant 0 : index
    %c0_0 = arith.constant 0 : index
    %0 = vector.load %arg1[%c0, %c0_0] : memref<32x64xf32, #tpu.memory_space<vmem>>, vector<32x64xf32>
    %c0_1 = arith.constant 0 : index
    %c0_2 = arith.constant 0 : index
    %1 = vector.load %arg3[%c0_1, %c0_2] : memref<64x16xbf16, #tpu.memory_space<vmem>>, vector<64x16xbf16>
    %2 = arith.truncf %0 : vector<32x64xf32> to vector<32x64xbf16>
    %cst = arith.constant dense<0.000000e+00> : vector<32x16xf32>
    %3 = tpu.matmul %2, %1, %cst {dimension_numbers = #tpu.dot_dimension_numbers<[1], [0], [0], [1], [0, 0, 1, 1], [], []>} : vector<32x64xbf16>, vector<64x16xbf16>, vector<32x16xf32> -> vector<32x16xf32>
    %c0_3 = arith.constant 0 : index
    %c0_4 = arith.constant 0 : index
    %4 = vector.load %arg2[%c0_3, %c0_4] : memref<32x16xf32, #tpu.memory_space<vmem>>, vector<32x16xf32>
    %5 = arith.addf %3, %4 : vector<32x16xf32>
    %c0_5 = arith.constant 0 : index
    %c0_6 = arith.constant 0 : index
    %6 = vector.load %arg4[%c0_5, %c0_6] : memref<1x16xf32, #tpu.memory_space<vmem>>, vector<1x16xf32>
    %c0_7 = arith.constant 0 : index
    %c0_8 = arith.constant 0 : index
    %7 = vector.load %arg5[%c0_7, %c0_8] : memref<1x16xf32, #tpu.memory_space<vmem>>, vector<1x16xf32>
    %cst_9 = arith.constant dense<0.000000e+00> : vector<32xf32>
    %8 = vector.multi_reduction <add>, %5, %cst_9 [1] : vector<32x16xf32> to vector<32xf32>
    %9 = vector.shape_cast %8 : vector<32xf32> to vector<32x1xf32>
    %cst_10 = arith.constant 1.600000e+01 : f32
    %10 = vector.broadcast %cst_10 : f32 to vector<32x1xf32>
    %11 = arith.divf %9, %10 : vector<32x1xf32>
    %12 = vector.broadcast %11 : vector<32x1xf32> to vector<32x16xf32>
    %13 = arith.subf %5, %12 : vector<32x16xf32>
    %14 = arith.mulf %13, %13 : vector<32x16xf32>
    %cst_11 = arith.constant dense<0.000000e+00> : vector<32xf32>
    %15 = vector.multi_reduction <add>, %14, %cst_11 [1] : vector<32x16xf32> to vector<32xf32>
    %16 = vector.shape_cast %15 : vector<32xf32> to vector<32x1xf32>
    %cst_12 = arith.constant 1.600000e+01 : f32
    %17 = vector.broadcast %cst_12 : f32 to vector<32x1xf32>
    %18 = arith.divf %16, %17 : vector<32x1xf32>
    %19 = vector.broadcast %11 : vector<32x1xf32> to vector<32x16xf32>
    %20 = arith.subf %5, %19 : vector<32x16xf32>
    %cst_13 = arith.constant 9.99999974E-6 : f32
    %21 = vector.broadcast %cst_13 : f32 to vector<32x1xf32>
    %22 = arith.addf %18, %21 : vector<32x1xf32>
    %23 = math.rsqrt %22 : vector<32x1xf32>
    %24 = vector.broadcast %23 : vector<32x1xf32> to vector<32x16xf32>
    %25 = arith.mulf %20, %24 : vector<32x16xf32>
    %26 = vector.broadcast %6 : vector<1x16xf32> to vector<32x16xf32>
    %27 = arith.mulf %25, %26 : vector<32x16xf32>
    %28 = vector.broadcast %7 : vector<1x16xf32> to vector<32x16xf32>
    %29 = arith.addf %27, %28 : vector<32x16xf32>
    %c0_14 = arith.constant 0 : index
    %c0_15 = arith.constant 0 : index
    %30 = vector.load %arg6[%c0_14, %c0_15] : memref<16x384xbf16, #tpu.memory_space<vmem>>, vector<16x384xbf16>
    %31 = arith.truncf %29 : vector<32x16xf32> to vector<32x16xbf16>
    %cst_16 = arith.constant dense<0.000000e+00> : vector<32x384xf32>
    %32 = tpu.matmul %31, %30, %cst_16 {dimension_numbers = #tpu.dot_dimension_numbers<[1], [0], [0], [1], [0, 0, 1, 1], [], []>} : vector<32x16xbf16>, vector<16x384xbf16>, vector<32x384xf32> -> vector<32x384xf32>
    %c0_17 = arith.constant 0 : index
    %c0_18 = arith.constant 0 : index
    %33 = vector.load %arg7[%c0_17, %c0_18] : memref<1x384xf32, #tpu.memory_space<vmem>>, vector<1x384xf32>
    %34 = vector.broadcast %33 : vector<1x384xf32> to vector<32x384xf32>
    %35 = arith.addf %32, %34 : vector<32x384xf32>
    %36 = vector.extract_strided_slice %35 {offsets = [0, 0], sizes = [32, 128], strides = [1, 1]} : vector<32x384xf32> to vector<32x128xf32>
    %37 = vector.extract_strided_slice %35 {offsets = [0, 128], sizes = [32, 128], strides = [1, 1]} : vector<32x384xf32> to vector<32x128xf32>
    %38 = vector.extract_strided_slice %35 {offsets = [0, 256], sizes = [32, 128], strides = [1, 1]} : vector<32x384xf32> to vector<32x128xf32>
    %39 = arith.truncf %36 : vector<32x128xf32> to vector<32x128xbf16>
    %40 = arith.truncf %37 : vector<32x128xf32> to vector<32x128xbf16>
    %cst_19 = arith.constant dense<0.000000e+00> : vector<32x32xf32>
    %41 = tpu.matmul %39, %40, %cst_19 {dimension_numbers = #tpu.dot_dimension_numbers<[1], [1], [0], [0], [0, 0, 1, 0], [], []>} : vector<32x128xbf16>, vector<32x128xbf16>, vector<32x32xf32> -> vector<32x32xf32>
    %c0_20 = arith.constant 0 : index
    %c0_21 = arith.constant 0 : index
    %42 = vector.load %arg8[%c0_20, %c0_21] : memref<32x32xf32, #tpu.memory_space<vmem>>, vector<32x32xf32>
    %43 = arith.addf %41, %42 : vector<32x32xf32>
    %cst_22 = arith.constant dense<0xFF800000> : vector<32xf32>
    %44 = vector.multi_reduction <maximumf>, %43, %cst_22 [1] : vector<32x32xf32> to vector<32xf32>
    %45 = vector.shape_cast %44 : vector<32xf32> to vector<32x1xf32>
    %46 = vector.broadcast %45 : vector<32x1xf32> to vector<32x32xf32>
    %47 = arith.subf %43, %46 : vector<32x32xf32>
    %48 = math.exp %47 : vector<32x32xf32>
    %cst_23 = arith.constant dense<0.000000e+00> : vector<32xf32>
    %49 = vector.multi_reduction <add>, %48, %cst_23 [1] : vector<32x32xf32> to vector<32xf32>
    %50 = vector.shape_cast %49 : vector<32xf32> to vector<32x1xf32>
    %51 = tpu.reciprocal %50 {approx = true} : vector<32x1xf32> -> vector<32x1xf32>
    %52 = vector.broadcast %51 : vector<32x1xf32> to vector<32x32xf32>
    %53 = arith.mulf %48, %52 : vector<32x32xf32>
    %54 = arith.truncf %53 : vector<32x32xf32> to vector<32x32xbf16>
    %55 = arith.truncf %38 : vector<32x128xf32> to vector<32x128xbf16>
    %cst_24 = arith.constant dense<0.000000e+00> : vector<32x128xf32>
    %56 = tpu.matmul %54, %55, %cst_24 {dimension_numbers = #tpu.dot_dimension_numbers<[1], [0], [0], [1], [0, 0, 1, 1], [], []>} : vector<32x32xbf16>, vector<32x128xbf16>, vector<32x128xf32> -> vector<32x128xf32>
    %c0_25 = arith.constant 0 : index
    %c0_26 = arith.constant 0 : index
    %57 = vector.load %arg9[%c0_25, %c0_26] : memref<128x64xbf16, #tpu.memory_space<vmem>>, vector<128x64xbf16>
    %58 = arith.truncf %56 : vector<32x128xf32> to vector<32x128xbf16>
    %cst_27 = arith.constant dense<0.000000e+00> : vector<32x64xf32>
    %59 = tpu.matmul %58, %57, %cst_27 {dimension_numbers = #tpu.dot_dimension_numbers<[1], [0], [0], [1], [0, 0, 1, 1], [], []>} : vector<32x128xbf16>, vector<128x64xbf16>, vector<32x64xf32> -> vector<32x64xf32>
    %c0_28 = arith.constant 0 : index
    %c0_29 = arith.constant 0 : index
    %60 = vector.load %arg10[%c0_28, %c0_29] : memref<1x64xf32, #tpu.memory_space<vmem>>, vector<1x64xf32>
    %61 = vector.broadcast %60 : vector<1x64xf32> to vector<32x64xf32>
    %62 = arith.addf %59, %61 : vector<32x64xf32>
    %63 = tpu.concatenate %5, %5, %5, %5 in 1 : vector<32x16xf32>, vector<32x16xf32>, vector<32x16xf32>, vector<32x16xf32> -> vector<32x64xf32>
    %64 = arith.addf %62, %63 : vector<32x64xf32>
    %c0_30 = arith.constant 0 : index
    %c0_31 = arith.constant 0 : index
    %65 = vector.load %arg11[%c0_30, %c0_31] : memref<64x64xbf16, #tpu.memory_space<vmem>>, vector<64x64xbf16>
    %66 = arith.truncf %64 : vector<32x64xf32> to vector<32x64xbf16>
    %cst_32 = arith.constant dense<0.000000e+00> : vector<32x64xf32>
    %67 = tpu.matmul %66, %65, %cst_32 {dimension_numbers = #tpu.dot_dimension_numbers<[1], [0], [0], [1], [0, 0, 1, 1], [], []>} : vector<32x64xbf16>, vector<64x64xbf16>, vector<32x64xf32> -> vector<32x64xf32>
    %68 = arith.subf %64, %67 : vector<32x64xf32>
    %69 = arith.mulf %68, %68 : vector<32x64xf32>
    %c0_33 = arith.constant 0 : index
    %c0_34 = arith.constant 0 : index
    %70 = vector.load %arg11[%c0_33, %c0_34] : memref<64x64xbf16, #tpu.memory_space<vmem>>, vector<64x64xbf16>
    %71 = arith.truncf %69 : vector<32x64xf32> to vector<32x64xbf16>
    %cst_35 = arith.constant dense<0.000000e+00> : vector<32x64xf32>
    %72 = tpu.matmul %71, %70, %cst_35 {dimension_numbers = #tpu.dot_dimension_numbers<[1], [0], [0], [1], [0, 0, 1, 1], [], []>} : vector<32x64xbf16>, vector<64x64xbf16>, vector<32x64xf32> -> vector<32x64xf32>
    %cst_36 = arith.constant 9.99999974E-6 : f32
    %73 = vector.broadcast %cst_36 : f32 to vector<32x64xf32>
    %74 = arith.addf %72, %73 : vector<32x64xf32>
    %75 = math.rsqrt %74 : vector<32x64xf32>
    %76 = arith.mulf %68, %75 : vector<32x64xf32>
    %c0_37 = arith.constant 0 : index
    %c0_38 = arith.constant 0 : index
    %77 = vector.load %arg12[%c0_37, %c0_38] : memref<1x64xf32, #tpu.memory_space<vmem>>, vector<1x64xf32>
    %78 = vector.broadcast %77 : vector<1x64xf32> to vector<32x64xf32>
    %79 = arith.mulf %76, %78 : vector<32x64xf32>
    %c0_39 = arith.constant 0 : index
    %c0_40 = arith.constant 0 : index
    %80 = vector.load %arg13[%c0_39, %c0_40] : memref<1x64xf32, #tpu.memory_space<vmem>>, vector<1x64xf32>
    %81 = vector.broadcast %80 : vector<1x64xf32> to vector<32x64xf32>
    %82 = arith.addf %79, %81 : vector<32x64xf32>
    %c0_41 = arith.constant 0 : index
    %c0_42 = arith.constant 0 : index
    %83 = vector.load %arg14[%c0_41, %c0_42] : memref<64x256xbf16, #tpu.memory_space<vmem>>, vector<64x256xbf16>
    %84 = arith.truncf %82 : vector<32x64xf32> to vector<32x64xbf16>
    %cst_43 = arith.constant dense<0.000000e+00> : vector<32x256xf32>
    %85 = tpu.matmul %84, %83, %cst_43 {dimension_numbers = #tpu.dot_dimension_numbers<[1], [0], [0], [1], [0, 0, 1, 1], [], []>} : vector<32x64xbf16>, vector<64x256xbf16>, vector<32x256xf32> -> vector<32x256xf32>
    %c0_44 = arith.constant 0 : index
    %c0_45 = arith.constant 0 : index
    %86 = vector.load %arg15[%c0_44, %c0_45] : memref<1x256xf32, #tpu.memory_space<vmem>>, vector<1x256xf32>
    %87 = vector.broadcast %86 : vector<1x256xf32> to vector<32x256xf32>
    %88 = arith.addf %85, %87 : vector<32x256xf32>
    %cst_46 = arith.constant 5.000000e-01 : f32
    %89 = vector.broadcast %cst_46 : f32 to vector<32x256xf32>
    %90 = arith.mulf %89, %88 : vector<32x256xf32>
    %cst_47 = arith.constant 4.471500e-02 : f32
    %91 = vector.broadcast %cst_47 : f32 to vector<32x256xf32>
    %92 = arith.mulf %91, %88 : vector<32x256xf32>
    %93 = arith.mulf %92, %88 : vector<32x256xf32>
    %94 = arith.mulf %93, %88 : vector<32x256xf32>
    %95 = arith.addf %88, %94 : vector<32x256xf32>
    %cst_48 = arith.constant 0.797884583 : f32
    %96 = vector.broadcast %cst_48 : f32 to vector<32x256xf32>
    %97 = arith.mulf %96, %95 : vector<32x256xf32>
    %98 = math.tanh %97 : vector<32x256xf32>
    %cst_49 = arith.constant 1.000000e+00 : f32
    %99 = vector.broadcast %cst_49 : f32 to vector<32x256xf32>
    %100 = arith.addf %99, %98 : vector<32x256xf32>
    %101 = arith.mulf %90, %100 : vector<32x256xf32>
    %c0_50 = arith.constant 0 : index
    %c0_51 = arith.constant 0 : index
    %102 = vector.load %arg16[%c0_50, %c0_51] : memref<256x64xbf16, #tpu.memory_space<vmem>>, vector<256x64xbf16>
    %103 = arith.truncf %101 : vector<32x256xf32> to vector<32x256xbf16>
    %cst_52 = arith.constant dense<0.000000e+00> : vector<32x64xf32>
    %104 = tpu.matmul %103, %102, %cst_52 {dimension_numbers = #tpu.dot_dimension_numbers<[1], [0], [0], [1], [0, 0, 1, 1], [], []>} : vector<32x256xbf16>, vector<256x64xbf16>, vector<32x64xf32> -> vector<32x64xf32>
    %c0_53 = arith.constant 0 : index
    %c0_54 = arith.constant 0 : index
    %105 = vector.load %arg17[%c0_53, %c0_54] : memref<1x64xf32, #tpu.memory_space<vmem>>, vector<1x64xf32>
    %106 = vector.broadcast %105 : vector<1x64xf32> to vector<32x64xf32>
    %107 = arith.addf %104, %106 : vector<32x64xf32>
    %108 = arith.addf %107, %64 : vector<32x64xf32>
    %c0_55 = arith.constant 0 : index
    %c0_56 = arith.constant 0 : index
    %109 = vector.load %arg18[%c0_55, %c0_56] : memref<64x64xbf16, #tpu.memory_space<vmem>>, vector<64x64xbf16>
    %110 = arith.truncf %108 : vector<32x64xf32> to vector<32x64xbf16>
    %cst_57 = arith.constant dense<0.000000e+00> : vector<32x64xf32>
    %111 = tpu.matmul %110, %109, %cst_57 {dimension_numbers = #tpu.dot_dimension_numbers<[1], [0], [0], [1], [0, 0, 1, 1], [], []>} : vector<32x64xbf16>, vector<64x64xbf16>, vector<32x64xf32> -> vector<32x64xf32>
    %c0_58 = arith.constant 0 : index
    %c0_59 = arith.constant 0 : index
    %112 = vector.load %arg11[%c0_58, %c0_59] : memref<64x64xbf16, #tpu.memory_space<vmem>>, vector<64x64xbf16>
    %113 = arith.truncf %111 : vector<32x64xf32> to vector<32x64xbf16>
    %cst_60 = arith.constant dense<0.000000e+00> : vector<32x64xf32>
    %114 = tpu.matmul %113, %112, %cst_60 {dimension_numbers = #tpu.dot_dimension_numbers<[1], [0], [0], [1], [0, 0, 1, 1], [], []>} : vector<32x64xbf16>, vector<64x64xbf16>, vector<32x64xf32> -> vector<32x64xf32>
    %cst_61 = arith.constant dense<0.000000e+00> : vector<64xf32>
    %115 = vector.multi_reduction <add>, %114, %cst_61 [0] : vector<32x64xf32> to vector<64xf32>
    %116 = vector.shape_cast %115 : vector<64xf32> to vector<1x64xf32>
    %cst_62 = arith.constant 3.200000e+01 : f32
    %117 = vector.broadcast %cst_62 : f32 to vector<1x64xf32>
    %118 = arith.divf %116, %117 : vector<1x64xf32>
    %119 = vector.broadcast %118 : vector<1x64xf32> to vector<32x64xf32>
    %120 = arith.subf %111, %119 : vector<32x64xf32>
    %121 = arith.mulf %120, %120 : vector<32x64xf32>
    %c0_63 = arith.constant 0 : index
    %c0_64 = arith.constant 0 : index
    %122 = vector.load %arg11[%c0_63, %c0_64] : memref<64x64xbf16, #tpu.memory_space<vmem>>, vector<64x64xbf16>
    %123 = arith.truncf %121 : vector<32x64xf32> to vector<32x64xbf16>
    %cst_65 = arith.constant dense<0.000000e+00> : vector<32x64xf32>
    %124 = tpu.matmul %123, %122, %cst_65 {dimension_numbers = #tpu.dot_dimension_numbers<[1], [0], [0], [1], [0, 0, 1, 1], [], []>} : vector<32x64xbf16>, vector<64x64xbf16>, vector<32x64xf32> -> vector<32x64xf32>
    %cst_66 = arith.constant dense<0.000000e+00> : vector<64xf32>
    %125 = vector.multi_reduction <add>, %124, %cst_66 [0] : vector<32x64xf32> to vector<64xf32>
    %126 = vector.shape_cast %125 : vector<64xf32> to vector<1x64xf32>
    %cst_67 = arith.constant 3.200000e+01 : f32
    %127 = vector.broadcast %cst_67 : f32 to vector<1x64xf32>
    %128 = arith.divf %126, %127 : vector<1x64xf32>
    %cst_68 = arith.constant 9.99999974E-5 : f32
    %129 = vector.broadcast %cst_68 : f32 to vector<1x64xf32>
    %130 = arith.addf %128, %129 : vector<1x64xf32>
    %131 = math.rsqrt %130 : vector<1x64xf32>
    %132 = vector.broadcast %131 : vector<1x64xf32> to vector<32x64xf32>
    %133 = arith.mulf %120, %132 : vector<32x64xf32>
    %c0_69 = arith.constant 0 : index
    %c0_70 = arith.constant 0 : index
    %134 = vector.load %arg19[%c0_69, %c0_70] : memref<1x64xf32, #tpu.memory_space<vmem>>, vector<1x64xf32>
    %135 = vector.broadcast %134 : vector<1x64xf32> to vector<32x64xf32>
    %136 = arith.mulf %133, %135 : vector<32x64xf32>
    %c0_71 = arith.constant 0 : index
    %c0_72 = arith.constant 0 : index
    %137 = vector.load %arg20[%c0_71, %c0_72] : memref<1x64xf32, #tpu.memory_space<vmem>>, vector<1x64xf32>
    %138 = vector.broadcast %137 : vector<1x64xf32> to vector<32x64xf32>
    %139 = arith.addf %136, %138 : vector<32x64xf32>
    %cst_73 = arith.constant 0.000000e+00 : f32
    %140 = vector.broadcast %cst_73 : f32 to vector<32x64xf32>
    %141 = arith.maximumf %139, %140 : vector<32x64xf32>
    %cst_74 = arith.constant 0.000000e+00 : f32
    %142 = vector.broadcast %cst_74 : f32 to vector<32x64xf32>
    %143 = tpu.concatenate %141, %142 in 1 : vector<32x64xf32>, vector<32x64xf32> -> vector<32x128xf32>
    %c0_75 = arith.constant 0 : index
    %c0_76 = arith.constant 0 : index
    %144 = vector.load %arg21[%c0_75, %c0_76] : memref<32x128xf32, #tpu.memory_space<vmem>>, vector<32x128xf32>
    tpu.vector_store %arg21[%c0_75, %c0_76], %143 {strides = array<i32>} : memref<32x128xf32, #tpu.memory_space<vmem>>, vector<32x128xf32>,
    return
  }
  func.func @transform_0(%arg0: i32) -> (i32, i32) {
    %c0_i32 = arith.constant 0 : i32
    %c0_i32_0 = arith.constant 0 : i32
    %c0_i32_1 = arith.constant 0 : i32
    return %c0_i32, %c0_i32_0 : i32, i32
  }
  func.func @transform_1(%arg0: i32) -> (i32, i32) {
    %c0_i32 = arith.constant 0 : i32
    %c0_i32_0 = arith.constant 0 : i32
    %c0_i32_1 = arith.constant 0 : i32
    return %c0_i32, %c0_i32_0 : i32, i32
  }
  func.func @transform_2(%arg0: i32) -> (i32, i32) {
    %c0_i32 = arith.constant 0 : i32
    %c0_i32_0 = arith.constant 0 : i32
    %c0_i32_1 = arith.constant 0 : i32
    return %c0_i32, %c0_i32_0 : i32, i32
  }
  func.func @transform_3(%arg0: i32) -> (i32, i32) {
    %c0_i32 = arith.constant 0 : i32
    %c0_i32_0 = arith.constant 0 : i32
    %c0_i32_1 = arith.constant 0 : i32
    return %c0_i32, %c0_i32_0 : i32, i32
  }
  func.func @transform_4(%arg0: i32) -> (i32, i32) {
    %c0_i32 = arith.constant 0 : i32
    %c0_i32_0 = arith.constant 0 : i32
    %c0_i32_1 = arith.constant 0 : i32
    return %c0_i32, %c0_i32_0 : i32, i32
  }
  func.func @transform_5(%arg0: i32) -> (i32, i32) {
    %c0_i32 = arith.constant 0 : i32
    %c0_i32_0 = arith.constant 0 : i32
    %c0_i32_1 = arith.constant 0 : i32
    return %c0_i32, %c0_i32_0 : i32, i32
  }
  func.func @transform_6(%arg0: i32) -> (i32, i32) {
    %c0_i32 = arith.constant 0 : i32
    %c0_i32_0 = arith.constant 0 : i32
    %c0_i32_1 = arith.constant 0 : i32
    return %c0_i32, %c0_i32_0 : i32, i32
  }
  func.func @transform_7(%arg0: i32) -> (i32, i32) {
    %c0_i32 = arith.constant 0 : i32
    %c0_i32_0 = arith.constant 0 : i32
    %c0_i32_1 = arith.constant 0 : i32
    return %c0_i32, %c0_i32_0 : i32, i32
  }
  func.func @transform_8(%arg0: i32) -> (i32, i32) {
    %c0_i32 = arith.constant 0 : i32
    %c0_i32_0 = arith.constant 0 : i32
    %c0_i32_1 = arith.constant 0 : i32
    return %c0_i32, %c0_i32_0 : i32, i32
  }
  func.func @transform_9(%arg0: i32) -> (i32, i32) {
    %c0_i32 = arith.constant 0 : i32
    %c0_i32_0 = arith.constant 0 : i32
    %c0_i32_1 = arith.constant 0 : i32
    return %c0_i32, %c0_i32_0 : i32, i32
  }
  func.func @transform_10(%arg0: i32) -> (i32, i32) {
    %c0_i32 = arith.constant 0 : i32
    %c0_i32_0 = arith.constant 0 : i32
    %c0_i32_1 = arith.constant 0 : i32
    return %c0_i32, %c0_i32_0 : i32, i32
  }
  func.func @transform_11(%arg0: i32) -> (i32, i32) {
    %c0_i32 = arith.constant 0 : i32
    %c0_i32_0 = arith.constant 0 : i32
    %c0_i32_1 = arith.constant 0 : i32
    return %c0_i32, %c0_i32_0 : i32, i32
  }
  func.func @transform_12(%arg0: i32) -> (i32, i32) {
    %c0_i32 = arith.constant 0 : i32
    %c0_i32_0 = arith.constant 0 : i32
    %c0_i32_1 = arith.constant 0 : i32
    return %c0_i32, %c0_i32_0 : i32, i32
  }
  func.func @transform_13(%arg0: i32) -> (i32, i32) {
    %c0_i32 = arith.constant 0 : i32
    %c0_i32_0 = arith.constant 0 : i32
    %c0_i32_1 = arith.constant 0 : i32
    return %c0_i32, %c0_i32_0 : i32, i32
  }
  func.func @transform_14(%arg0: i32) -> (i32, i32) {
    %c0_i32 = arith.constant 0 : i32
    %c0_i32_0 = arith.constant 0 : i32
    %c0_i32_1 = arith.constant 0 : i32
    return %c0_i32, %c0_i32_0 : i32, i32
  }
  func.func @transform_15(%arg0: i32) -> (i32, i32) {
    %c0_i32 = arith.constant 0 : i32
    %c0_i32_0 = arith.constant 0 : i32
    %c0_i32_1 = arith.constant 0 : i32
    return %c0_i32, %c0_i32_0 : i32, i32
  }
  func.func @transform_16(%arg0: i32) -> (i32, i32) {
    %c0_i32 = arith.constant 0 : i32
    %c0_i32_0 = arith.constant 0 : i32
    %c0_i32_1 = arith.constant 0 : i32
    return %c0_i32, %c0_i32_0 : i32, i32
  }
  func.func @transform_17(%arg0: i32) -> (i32, i32) {
    %c0_i32 = arith.constant 0 : i32
    %c0_i32_0 = arith.constant 0 : i32
    %c0_i32_1 = arith.constant 0 : i32
    return %c0_i32, %c0_i32_0 : i32, i32
  }
  func.func @transform_18(%arg0: i32) -> (i32, i32) {
    %c0_i32 = arith.constant 0 : i32
    %c0_i32_0 = arith.constant 0 : i32
    %c0_i32_1 = arith.constant 0 : i32
    return %c0_i32, %c0_i32_0 : i32, i32
  }
  func.func @transform_19(%arg0: i32) -> (i32, i32) {
    %c0_i32 = arith.constant 0 : i32
    %c0_i32_0 = arith.constant 0 : i32
    %c0_i32_1 = arith.constant 0 : i32
    return %c0_i32, %c0_i32_0 : i32, i32
  }
  func.func @transform_20(%arg0: i32) -> (i32, i32) {
    %c0_i32 = arith.constant 0 : i32
    %c0_i32_0 = arith.constant 0 : i32
    %c0_i32_1 = arith.constant 0 : i32
    return %c0_i32, %c0_i32_0 : i32, i32
  }
}

</mosaic_0001>

<bundles_post_ra>
// kernel: transformer_stack_encoder.1
= control target key start
LH: loop header
LB: loop body
LE: loop exit
PB: predicated region body
PF: predicated region fallthrough
CT: control target
= control target key end

     0   :  { %vm108_vm0 = vcmask 523264   ;;  %vm136_vm1 = vcmask 130048   ;;  %v1619_v26 = vmov 16.0   ;;  %vm366_vm15 = vcmask 261120   ;;  %s1621_s27 = smov 48   ;;  %s2178_s2 = inlined_call_operand.vmem [shape: bf16[64,16], index: 2, kind: input, shape index: {}]   ;;  %s2179_s0 = inlined_call_operand.vmem [shape: f32[32,64], index: 0, kind: input, shape index: {}]   ;;  %s2180_s1 = inlined_call_operand.vmem [shape: f32[32,16], index: 1, kind: input, shape index: {}]   ;;  %s2181_s3 = inlined_call_operand.vmem [shape: f32[1,16], index: 3, kind: input, shape index: {}]   ;;  %s2182_s4 = inlined_call_operand.vmem [shape: f32[1,16], index: 4, kind: input, shape index: {}]   ;;  %s2183_s5 = inlined_call_operand.vmem [shape: bf16[16,384], index: 5, kind: input, shape index: {}]   ;;  %s2184_s6 = inlined_call_operand.vmem [shape: f32[1,384], index: 6, kind: input, shape index: {}]   ;;  %s2185_s7 = inlined_call_operand.vmem [shape: f32[32,32], index: 7, kind: input, shape index: {}]   ;;  %s2186_s8 = inlined_call_operand.vmem [shape: bf16[128,64], index: 8, kind: input, shape index: {}]   ;;  %s2187_s9 = inlined_call_operand.vmem [shape: f32[1,64], index: 9, kind: input, shape index: {}]   ;;  %s2188_s10 = inlined_call_operand.vmem [shape: bf16[64,64], index: 10, kind: input, shape index: {}]   ;;  %s2189_s11 = inlined_call_operand.vmem [shape: f32[1,64], index: 11, kind: input, shape index: {}]   ;;  %s2190_s12 = inlined_call_operand.vmem [shape: f32[1,64], index: 12, kind: input, shape index: {}]   ;;  %s2191_s13 = inlined_call_operand.vmem [shape: bf16[64,256], index: 13, kind: input, shape index: {}]   ;;  %s2192_s16 = inlined_call_operand.vmem [shape: f32[1,64], index: 16, kind: input, shape index: {}]   ;;  %s2193_s15 = inlined_call_operand.vmem [shape: bf16[256,64], index: 15, kind: input, shape index: {}]   ;;  %s2194_s14 = inlined_call_operand.vmem [shape: f32[1,256], index: 14, kind: input, shape index: {}]   ;;  %s2195_s17 = inlined_call_operand.vmem [shape: bf16[64,64], index: 17, kind: input, shape index: {}]   ;;  %s2196_s18 = inlined_call_operand.vmem [shape: f32[1,64], index: 18, kind: input, shape index: {}]   ;;  %s2197_s19 = inlined_call_operand.vmem [shape: f32[1,64], index: 19, kind: input, shape index: {}]   ;;  %s2198_s20 = inlined_call_operand.vmem [shape: f32[32,128], index: 20, kind: output, shape index: {}]  }
   0x1   :  { %2202 = sst [smem:[#allocation2_spill]] %s2178_s2  ;;  %1565 = vrcp.f32 %v1619_v26  ;;  %v1313_v55 = vld [vmem:[%s2183_s5] sm:$0xf]  ;;  %v1510_v56 = vld [vmem:[%s2183_s5 + $0x8] sm:$0xf0] }
   0x2   :  { %2203 = sst [smem:[#allocation3_spill]] %s2179_s0  ;;  %v1509_v57 = vld [vmem:[%s2183_s5 + $0x4] sm:$0xf]  ;;  %v1314_v58 = vor.u32 %v1510_v56, %v1313_v55  ;;  %v1315_v59 = vld [vmem:[%s2183_s5 + $0xc] sm:$0xf0] }
   0x3   :  { %2204 = sst [smem:[#allocation4_spill]] %s2180_s1  ;;  %v1321_v60 = vld [vmem:[%s2183_s5 + $0x8] sm:$0xf]  ;;  %v1511_v61 = vld [vmem:[%s2183_s5 + $0x10] sm:$0xf0]  ;;  %v1318_v63 = vor.u32 %v1509_v57, %v1315_v59  ;;  %s1622_s5 = smov 32  }
   0x4   :  { %2205 = sst [smem:[#allocation5_spill]] %s2181_s3  ;;  %289 = vmatpush.bf16.msra.mxu1 %v1314_v58 }
   0x5   :  { %2206 = sst [smem:[#allocation6_spill]] %s2182_s4  ;;  %308 = vmatpush.bf16.msra.mxu2 %v1318_v63 }
   0x6   :  { %s2207_s23 = sld [smem:[#allocation2_spill]] }
   0x7   :  { %s2208_s29 = sld [smem:[#allocation3_spill]]  ;;  %v1566_v27 = vpop.eup %1565 }
   0x8   :  { %s2209_s25 = sld [smem:[#allocation4_spill]]  ;;  %v150_v28 = vmul.f32 16.0, %v1566_v27  ;;  %vm154_vm2 = vweird.f32 %v1566_v27 }
   0x9   :  { %s2210_s4 = sld [smem:[#allocation5_spill]] }
   0xa   :  { %v151_v29 = vsub.f32 1.0, %v150_v28  ;;  %s2211_s2 = sld [smem:[#allocation6_spill]] }
   0xc   :  { %v1508_v0 = vld [vmem:[%s2207_s23 + $0x18] sm:$0xff]  ;;  %v1507_v1 = vld [vmem:[%s2207_s23 + $0x10] sm:$0xff]  ;;  %v1506_v2 = vld [vmem:[%s2207_s23 + $0x8] sm:$0xff]  ;;  %v152_v30 = vmul.f32 %v1566_v27, %v151_v29 }
   0xd   :  { %119 = vmatpush.bf16.msra.mxu0 %v1508_v0  ;;  %v1505_v3 = vld [vmem:[%s2207_s23] sm:$0xff]  ;;  %v67_v5 = vld [vmem:[%s2208_s29 + $0x8] sm:$0xff]  ;;  %v68_v7 = vld [vmem:[%s2208_s29 + $0x10] sm:$0xff]  ;;  %v1322_v0 = vor.u32 %v1511_v61, %v1321_v60 }
   0xe   :  { %v66_v4 = vld [vmem:[%s2208_s29] sm:$0xff]  ;;  %v69_v8 = vld [vmem:[%s2208_s29 + $0x18] sm:$0xff]  ;;  %v81_v14 = vld [vmem:[%s2209_s25 + $0x8] sm:$0xff]  ;;  %v153_v31 = vadd.f32 %v1566_v27, %v152_v30 }
   0xf   :  { %v78_v6 = vpack.c.bf16 %v67_v5, %v66_v4  ;;  %v79_v9 = vpack.c.bf16 %v69_v8, %v68_v7  ;;  %v80_v10 = vld [vmem:[%s2209_s25] sm:$0xff]  ;;  %v82_v18 = vld [vmem:[%s2209_s25 + $0x10] sm:$0xff]  ;;  %v83_v22 = vld [vmem:[%s2209_s25 + $0x18] sm:$0xff]  ;;  %327 = vmatpush.bf16.msra.mxu3 %v1322_v0 }
  0x10   :  { %v1783_v32 = vsel %vm154_vm2, %v1566_v27, %v153_v31  ;;  %v1557_v28 = vld [vmem:[%s2210_s4] ss:$0 sm:$0xff]  ;;  %vm577_vm2 = vcmask 392192  }
  0x11   :  { %120 = vmatpush.bf16.msra.mxu0 %v1507_v1 }
  0x15   :  { %121 = vmatpush.bf16.msra.mxu0 %v1506_v2 }
  0x19   :  { %122 = vmatpush.bf16.msra.mxu0 %v1505_v3 }
  0x1c   :  { %1309 = vmatmul.msk.bf16.vlgmr.msra.gmra.mxu0 %vm108_vm0, %v78_v6 }
  0x2c   :  { %1310 = vmatmul.msk.bf16.gmra.mxu0 %vm108_vm0, %v79_v9 }
  0x99   :  { %v124_v11 = vpop.f32.mrf.mxu0 }
  0x9a   :  { %v1758_v12 = vadd.f32 %v124_v11, %v80_v10 }
  0x9c   :  { %v137_v13 = vsel %vm136_vm1, %v1758_v12, 0.0 }
  0x9d   :  { %138 = vadd.xlane.f32.xlu0 %v137_v13 }
  0xa1   :  { %v126_v15 = vpop.f32.mrf.mxu0 }
  0xa2   :  { %v1765_v16 = vadd.f32 %v126_v15, %v81_v14 }
  0xa4   :  { %v140_v17 = vsel %vm136_vm1, %v1765_v16, 0.0 }
  0xa5   :  { %141 = vadd.xlane.f32.xlu0 %v140_v17 }
  0xa9   :  { %v129_v19 = vpop.f32.mrf.mxu0 }
  0xaa   :  { %v1772_v20 = vadd.f32 %v129_v19, %v82_v18 }
  0xac   :  { %v143_v21 = vsel %vm136_vm1, %v1772_v20, 0.0 }
  0xad   :  { %144 = vadd.xlane.f32.xlu1 %v143_v21 }
  0xb1   :  { %v131_v23 = vpop.f32.mrf.mxu0 }
  0xb2   :  { %v1779_v24 = vadd.f32 %v131_v23, %v83_v22 }
  0xb4   :  { %v146_v25 = vsel %vm136_vm1, %v1779_v24, 0.0 }
  0xb5   :  { %147 = vadd.xlane.f32.xlu1 %v146_v25 }
 0x110   :  { %v139_v33 = vpop.xlane.xlu0 %138 }
 0x111   :  { %v156_v34 = vmul.f32 %v1783_v32, %v139_v33 }
 0x113   :  { %v1787_v35 = vsub.f32 %v1758_v12, %v156_v34 }
 0x115   :  { %v164_v36 = vmul.f32 %v1787_v35, %v1787_v35 }
 0x117   :  { %v168_v37 = vsel %vm136_vm1, %v164_v36, 0.0  ;;  %v1558_v36 = vld [vmem:[%s2211_s2] ss:$0 sm:$0xff] }
 0x118   :  { %169 = vadd.xlane.f32.xlu2 %v168_v37  ;;  %v142_v38 = vpop.xlane.xlu0 %141 }
 0x119   :  { %v157_v39 = vmul.f32 %v1783_v32, %v142_v38 }
 0x11b   :  { %v1794_v40 = vsub.f32 %v1765_v16, %v157_v39 }
 0x11d   :  { %v165_v41 = vmul.f32 %v1794_v40, %v1794_v40 }
 0x11f   :  { %v171_v42 = vsel %vm136_vm1, %v165_v41, 0.0 }
 0x120   :  { %v145_v43 = vpop.xlane.xlu1 %144  ;;  %172 = vadd.xlane.f32.xlu2 %v171_v42 }
 0x121   :  { %v158_v44 = vmul.f32 %v1783_v32, %v145_v43 }
 0x123   :  { %v1801_v45 = vsub.f32 %v1772_v20, %v158_v44 }
 0x125   :  { %v166_v46 = vmul.f32 %v1801_v45, %v1801_v45 }
 0x127   :  { %v174_v47 = vsel %vm136_vm1, %v166_v46, 0.0 }
 0x128   :  { %v148_v48 = vpop.xlane.xlu1 %147  ;;  %175 = vadd.xlane.f32.xlu0 %v174_v47 }
 0x129   :  { %v159_v49 = vmul.f32 %v1783_v32, %v148_v48 }
 0x12b   :  { %v1808_v50 = vsub.f32 %v1779_v24, %v159_v49 }
 0x12d   :  { %v167_v51 = vmul.f32 %v1808_v50, %v1808_v50 }
 0x12f   :  { %v177_v52 = vsel %vm136_vm1, %v167_v51, 0.0 }
 0x130   :  { %178 = vadd.xlane.f32.xlu1 %v177_v52 }
 0x18b   :  { %v170_v53 = vpop.xlane.xlu2 %169 }
 0x18c   :  { %v180_v54 = vmul.f32 %v170_v53, %v1783_v32 }
 0x18e   :  { %v184_v62 = vadd.f32 1e-05, %v180_v54 }
 0x190   :  { %1567 = vrsqrt.f32 %v184_v62  ;;  %vm194_vm4 = vweird.f32 %v184_v62 }
 0x193   :  { %v173_v1 = vpop.xlane.xlu2 %172 }
 0x194   :  { %v181_v2 = vmul.f32 %v173_v1, %v1783_v32 }
 0x196   :  { %v1568_v3 = vpop.eup %1567  ;;  %v185_v4 = vadd.f32 1e-05, %v181_v2 }
 0x197   :  { %v189_v5 = vmul.f32 %v1568_v3, %v184_v62  ;;  %vm195_vm3 = vweird.f32 %v1568_v3 }
 0x198   :  { %1569 = vrsqrt.f32 %v185_v4  ;;  %vm196_vm5 = vmor %vm194_vm4, %vm195_vm3  ;;  %vm204_vm7 = vweird.f32 %v185_v4 }
 0x199   :  { %v190_v6 = vmul.f32 %v1568_v3, %v189_v5 }
 0x19b   :  { %v191_v7 = vmul.f32 0.5, %v190_v6  ;;  %v176_v8 = vpop.xlane.xlu0 %175 }
 0x19c   :  { %v182_v9 = vmul.f32 %v176_v8, %v1783_v32 }
 0x19d   :  { %v192_v10 = vsub.f32 1.5, %v191_v7 }
 0x19e   :  { %v1570_v11 = vpop.eup %1569  ;;  %v186_v13 = vadd.f32 1e-05, %v182_v9 }
 0x19f   :  { %v193_v14 = vmul.f32 %v1568_v3, %v192_v10  ;;  %v199_v15 = vmul.f32 %v1570_v11, %v185_v4  ;;  %vm205_vm6 = vweird.f32 %v1570_v11 }
 0x1a0   :  { %1571 = vrsqrt.f32 %v186_v13  ;;  %vm206_vm8 = vmor %vm204_vm7, %vm205_vm6  ;;  %vm214_vm10 = vweird.f32 %v186_v13 }
 0x1a1   :  { %v200_v17 = vmul.f32 %v1570_v11, %v199_v15  ;;  %v197_v18 = vsel %vm196_vm5, %v1568_v3, %v193_v14 }
 0x1a2   :  { %v228_v26 = vmul.f32 %v197_v18, %v1787_v35 }
 0x1a3   :  { %v201_v19 = vmul.f32 0.5, %v200_v17  ;;  %v179_v21 = vpop.xlane.xlu1 %178 }
 0x1a4   :  { %v183_v22 = vmul.f32 %v179_v21, %v1783_v32  ;;  %v235_v32 = vmul.f32 %v1557_v28, %v228_v26 }
 0x1a5   :  { %v202_v23 = vsub.f32 1.5, %v201_v19 }
 0x1a6   :  { %v1572_v25 = vpop.eup %1571  ;;  %v187_v27 = vadd.f32 1e-05, %v183_v22  ;;  %v242_v41 = vadd.f32 %v1558_v36, %v235_v32 }
 0x1a7   :  { %v203_v29 = vmul.f32 %v1570_v11, %v202_v23  ;;  %v209_v30 = vmul.f32 %v1572_v25, %v186_v13  ;;  %vm215_vm9 = vweird.f32 %v1572_v25 }
 0x1a8   :  { %1573 = vrsqrt.f32 %v187_v27  ;;  %vm216_vm11 = vmor %vm214_vm10, %vm215_vm9  ;;  %vm224_vm13 = vweird.f32 %v187_v27 }
 0x1a9   :  { %v207_v31 = vsel %vm206_vm8, %v1570_v11, %v203_v29  ;;  %v210_v33 = vmul.f32 %v1572_v25, %v209_v30 }
 0x1aa   :  { %v229_v34 = vmul.f32 %v207_v31, %v1794_v40 }
 0x1ab   :  { %v211_v35 = vmul.f32 0.5, %v210_v33  ;;  %v343_v33 = vld [vmem:[%s2185_s7] sm:$0xff] }
 0x1ac   :  { %v236_v37 = vmul.f32 %v1557_v28, %v229_v34 }
 0x1ad   :  { %v212_v38 = vsub.f32 1.5, %v211_v35  ;;  %v344_v35 = vld [vmem:[%s2185_s7 + $0x8] sm:$0xff] }
 0x1ae   :  { %v1574_v39 = vpop.eup %1573  ;;  %v243_v42 = vadd.f32 %v1558_v36, %v236_v37 }
 0x1af   :  { %v213_v43 = vmul.f32 %v1572_v25, %v212_v38  ;;  %v219_v44 = vmul.f32 %v1574_v39, %v187_v27  ;;  %vm225_vm12 = vweird.f32 %v1574_v39 }
 0x1b0   :  { %v250_v46 = vpack.c.bf16 %v243_v42, %v242_v41  ;;  %vm226_vm14 = vmor %vm224_vm13, %vm225_vm12  ;;  %v345_v41 = vld [vmem:[%s2185_s7 + $0x10] sm:$0xff] }
 0x1b1   :  { %v220_v47 = vmul.f32 %v1574_v39, %v219_v44  ;;  %v217_v40 = vsel %vm216_vm11, %v1572_v25, %v213_v43 }
 0x1b2   :  { %1323 = vmatmul.msk.bf16.vlgmr.msra.gmra.mxu1 %vm136_vm1, %v250_v46  ;;  %1325 = vmatmul.msk.bf16.vlgmr.msra.gmra.mxu2 %vm136_vm1, %v250_v46  ;;  %v230_v51 = vmul.f32 %v217_v40, %v1801_v45 }
 0x1b3   :  { %v221_v48 = vmul.f32 0.5, %v220_v47  ;;  %1327 = vmatmul.msk.bf16.vlgmr.msra.gmra.mxu3 %vm136_vm1, %v250_v46  ;;  %v346_v46 = vld [vmem:[%s2185_s7 + $0x18] sm:$0xff]  ;;  %s1620_s7 = smov 16  }
 0x1b4   :  { %v237_v55 = vmul.f32 %v1557_v28, %v230_v51 }
 0x1b5   :  { %v222_v49 = vsub.f32 1.5, %v221_v48 }
 0x1b6   :  { %v244_v57 = vadd.f32 %v1558_v36, %v237_v55 }
 0x1b7   :  { %v223_v52 = vmul.f32 %v1574_v39, %v222_v49 }
 0x1b9   :  { %v227_v53 = vsel %vm226_vm14, %v1574_v39, %v223_v52 }
 0x1ba   :  { %v231_v54 = vmul.f32 %v227_v53, %v1808_v50  ;;  %v252_v50 = vld [vmem:[%s2184_s6] sm:$0x7] }
 0x1bb   :  { %v255_v2 = vperm.slane %v252_v50, 1  ;;  %v256_v3 = vperm.slane %v252_v50, 2  ;;  %v254_v22 = vperm.slane %v252_v50, 0 }
 0x1bc   :  { %v238_v56 = vmul.f32 %v1557_v28, %v231_v54 }
 0x1be   :  { %v245_v58 = vadd.f32 %v1558_v36, %v238_v56 }
 0x1c0   :  { %v251_v59 = vpack.c.bf16 %v245_v58, %v244_v57 }
 0x1c2   :  { %1324 = vmatmul.msk.bf16.gmra.mxu1 %vm136_vm1, %v251_v59  ;;  %1326 = vmatmul.msk.bf16.gmra.mxu2 %vm136_vm1, %v251_v59 }
 0x1c3   :  { %1328 = vmatmul.msk.bf16.gmra.mxu3 %vm136_vm1, %v251_v59 }
 0x22f   :  { %v291_v1 = vpop.f32.mrf.mxu1 }
 0x230   :  { %v292_v25 = vadd.f32 %v291_v1, %v254_v22 }
 0x235   :  { %v310_v60 = vpop.f32.mrf.mxu2 }
 0x236   :  { %v329_v61 = vpop.f32.mrf.mxu3  ;;  %v311_v19 = vadd.f32 %v310_v60, %v255_v2 }
 0x237   :  { %v330_v14 = vadd.f32 %v329_v61, %v256_v3  ;;  %v293_v15 = vpop.f32.mrf.mxu1 }
 0x238   :  { %v294_v23 = vadd.f32 %v293_v15, %v254_v22 }
 0x23a   :  { %v339_v27 = vpack.c.bf16 %v294_v23, %v292_v25  ;;  %v1517_v23 = vld [vmem:[%s2186_s8 + $0x28] sm:$0xff]  ;;  %v1516_v25 = vld [vmem:[%s2186_s8 + $0x20] sm:$0xff] }
 0x23d   :  { %v312_v45 = vpop.f32.mrf.mxu2 }
 0x23e   :  { %v331_v62 = vpop.f32.mrf.mxu3  ;;  %v313_v17 = vadd.f32 %v312_v45, %v255_v2 }
 0x23f   :  { %v332_v11 = vadd.f32 %v331_v62, %v256_v3  ;;  %v296_v26 = vpop.f32.mrf.mxu1 }
 0x240   :  { %v341_v21 = vpack.c.bf16 %v313_v17, %v311_v19  ;;  %v297_v30 = vadd.f32 %v296_v26, %v254_v22  ;;  %v1515_v26 = vld [vmem:[%s2186_s8 + $0x18] sm:$0xff] }
 0x241   :  { %v413_v18 = vpack.c.bf16 %v332_v11, %v330_v14 }
 0x245   :  { %v315_v63 = vpop.f32.mrf.mxu2 }
 0x246   :  { %v334_v0 = vpop.f32.mrf.mxu3  ;;  %v316_v5 = vadd.f32 %v315_v63, %v255_v2 }
 0x247   :  { %v335_v8 = vadd.f32 %v334_v0, %v256_v3  ;;  %v298_v28 = vpop.f32.mrf.mxu1 }
 0x248   :  { %v299_v29 = vadd.f32 %v298_v28, %v254_v22  ;;  %v1518_v22 = vld [vmem:[%s2186_s8 + $0x30] sm:$0xff]  ;;  %v1513_v28 = vld [vmem:[%s2186_s8 + $0x8] sm:$0xff] }
 0x24a   :  { %v340_v31 = vpack.c.bf16 %v299_v29, %v297_v30  ;;  %v1512_v29 = vld [vmem:[%s2186_s8] sm:$0xff] }
 0x24d   :  { %v317_v4 = vpop.f32.mrf.mxu2 }
 0x24e   :  { %v318_v6 = vadd.f32 %v317_v4, %v255_v2  ;;  %v336_v7 = vpop.f32.mrf.mxu3 }
 0x24f   :  { %v337_v9 = vadd.f32 %v336_v7, %v256_v3 }
 0x250   :  { %v342_v10 = vpack.c.bf16 %v318_v6, %v316_v5 }
 0x251   :  { %v414_v13 = vpack.c.bf16 %v337_v9, %v335_v8 }
 0x252   :  { %353 = vmatpush.bf16.xpose.msrb.mxu1 %v342_v10 }
 0x253   :  { %427 = vmatpush.bf16.msrb.mxu2 %v414_v13 }
 0x257   :  { %428 = vmatpush.bf16.msrb.mxu2 %v413_v18 }
 0x25a   :  { %354 = vmatpush.bf16.xpose.msrb.mxu1 %v341_v21  ;;  %v1519_v21 = vld [vmem:[%s2186_s8 + $0x38] sm:$0xff] }
 0x25b   :  { %510 = vmatpush.bf16.msrb.mxu3 %v1519_v21 }
 0x25f   :  { %511 = vmatpush.bf16.msrb.mxu3 %v1518_v22 }
 0x261   :  { %355 = vmatmul.bf16.vlgmr.msrb.gmra.mxu1 %v339_v27  ;;  %v1514_v27 = vld [vmem:[%s2186_s8 + $0x10] sm:$0xff] }
 0x263   :  { %512 = vmatpush.bf16.msrb.mxu3 %v1517_v23 }
 0x267   :  { %513 = vmatpush.bf16.msrb.mxu3 %v1516_v25 }
 0x26b   :  { %514 = vmatpush.bf16.msrb.mxu3 %v1515_v26 }
 0x26f   :  { %515 = vmatpush.bf16.msrb.mxu3 %v1514_v27 }
 0x271   :  { %360 = vmatmul.bf16.gmra.mxu1 %v340_v31 }
 0x273   :  { %516 = vmatpush.bf16.msrb.mxu3 %v1513_v28 }
 0x277   :  { %517 = vmatpush.bf16.msrb.mxu3 %v1512_v29  ;;  %v1409_v29 = vld [vmem:[%s2191_s13 + $0x30] sm:$0xf] }
 0x2de   :  { %v356_v34 = vpop.f32.mrf.mxu1 }
 0x2df   :  { %v357_v32 = vadd.f32 %v356_v34, %v343_v33 }
 0x2e1   :  { %v367_v36 = vsel %vm366_vm15, %v357_v32, -inf }
 0x2e2   :  { %368 = vmax.xlane.f32.xlu2 %v367_v36 }
 0x2e6   :  { %v358_v37 = vpop.f32.mrf.mxu1 }
 0x2e7   :  { %v359_v38 = vadd.f32 %v358_v37, %v344_v35  ;;  %v1915_v35 = vld [vmem:[%s2188_s10 + $0x18] sm:$0xff]  ;;  %v1922_v37 = vld [vmem:[%s2188_s10 + $0x10] sm:$0xff] }
 0x2e8   :  { %630 = vmatpush.bf16.msrb.mxu0 %v1915_v35  ;;  %665 = vmatpush.bf16.msra.mxu1 %v1915_v35 }
 0x2e9   :  { %v370_v39 = vsel %vm366_vm15, %v359_v38, -inf }
 0x2ea   :  { %371 = vmax.xlane.f32.xlu0 %v370_v39  ;;  %v1936_v39 = vld [vmem:[%s2188_s10] sm:$0xff] }
 0x2ec   :  { %631 = vmatpush.bf16.msrb.mxu0 %v1922_v37  ;;  %666 = vmatpush.bf16.msra.mxu1 %v1922_v37 }
 0x2ee   :  { %v361_v42 = vpop.f32.mrf.mxu1 }
 0x2ef   :  { %v362_v43 = vadd.f32 %v361_v42, %v345_v41 }
 0x2f1   :  { %v373_v44 = vsel %vm366_vm15, %v362_v43, -inf }
 0x2f2   :  { %374 = vmax.xlane.f32.xlu1 %v373_v44 }
 0x2f6   :  { %v363_v47 = vpop.f32.mrf.mxu1 }
 0x2f7   :  { %v364_v40 = vadd.f32 %v363_v47, %v346_v46 }
 0x2f9   :  { %v376_v48 = vsel %vm366_vm15, %v364_v40, -inf }
 0x2fa   :  { %377 = vmax.xlane.f32.xlu2 %v376_v48 }
 0x355   :  { %v369_v49 = vpop.xlane.xlu2 %368 }
 0x356   :  { %v379_v51 = vsub.f32 %v357_v32, %v369_v49 }
 0x358   :  { %v383_v52 = vmul.f32 1.442695, %v379_v51 }
 0x35a   :  { %1575 = vpow2.f32 %v383_v52 }
 0x35d   :  { %v372_v53 = vpop.xlane.xlu0 %371 }
 0x35e   :  { %v380_v54 = vsub.f32 %v359_v38, %v372_v53  ;;  %v1929_v38 = vld [vmem:[%s2188_s10 + $0x8] sm:$0xff] }
 0x35f   :  { %632 = vmatpush.bf16.msrb.mxu0 %v1929_v38  ;;  %667 = vmatpush.bf16.msra.mxu1 %v1929_v38 }
 0x360   :  { %v1576_v55 = vpop.eup %1575  ;;  %v385_v56 = vmul.f32 1.442695, %v380_v54 }
 0x361   :  { %v391_v57 = vsel %vm366_vm15, %v1576_v55, 0.0 }
 0x362   :  { %1577 = vpow2.f32 %v385_v56  ;;  %392 = vadd.xlane.f32.xlu0 %v391_v57 }
 0x363   :  { %633 = vmatpush.bf16.msrb.mxu0 %v1936_v39  ;;  %668 = vmatpush.bf16.msra.mxu1 %v1936_v39 }
 0x365   :  { %v375_v58 = vpop.xlane.xlu1 %374 }
 0x366   :  { %v381_v59 = vsub.f32 %v362_v43, %v375_v58 }
 0x368   :  { %v1578_v60 = vpop.eup %1577  ;;  %v387_v61 = vmul.f32 1.442695, %v381_v59 }
 0x369   :  { %v394_v45 = vsel %vm366_vm15, %v1578_v60, 0.0 }
 0x36a   :  { %1579 = vpow2.f32 %v387_v61  ;;  %395 = vadd.xlane.f32.xlu1 %v394_v45 }
 0x36d   :  { %v378_v62 = vpop.xlane.xlu2 %377 }
 0x36e   :  { %v382_v63 = vsub.f32 %v364_v40, %v378_v62  ;;  %v1559_v40 = vld [vmem:[%s2187_s9] ss:$0 sm:$0xff] }
 0x370   :  { %v1580_v0 = vpop.eup %1579  ;;  %v389_v1 = vmul.f32 1.442695, %v382_v63 }
 0x371   :  { %v397_v50 = vsel %vm366_vm15, %v1580_v0, 0.0 }
 0x372   :  { %1581 = vpow2.f32 %v389_v1  ;;  %398 = vadd.xlane.f32.xlu2 %v397_v50 }
 0x378   :  { %v1582_v2 = vpop.eup %1581 }
 0x379   :  { %v400_v3 = vsel %vm366_vm15, %v1582_v2, 0.0 }
 0x37a   :  { %401 = vadd.xlane.f32.xlu0 %v400_v3 }
 0x383   :  { %533 = vrot.lane.b32.xlu1 %v1758_v12, %s1620_s7 }
 0x38a   :  { %535 = vrot.lane.b32.xlu2 %v1765_v16, %s1620_s7 }
 0x38b   :  { %557 = vrot.lane.b32.xlu1 %v1758_v12, %s1621_s27 }
 0x38e   :  { %545 = vrot.lane.b32.xlu0 %v1758_v12, %s1622_s5 }
 0x392   :  { %547 = vrot.lane.b32.xlu2 %v1765_v16, %s1622_s5 }
 0x393   :  { %539 = vrot.lane.b32.xlu1 %v1779_v24, %s1620_s7 }
 0x396   :  { %559 = vrot.lane.b32.xlu0 %v1765_v16, %s1621_s27 }
 0x39a   :  { %537 = vrot.lane.b32.xlu2 %v1772_v20, %s1620_s7 }
 0x39b   :  { %561 = vrot.lane.b32.xlu1 %v1772_v20, %s1621_s27 }
 0x39e   :  { %549 = vrot.lane.b32.xlu0 %v1772_v20, %s1622_s5 }
 0x3a2   :  { %551 = vrot.lane.b32.xlu2 %v1779_v24, %s1622_s5 }
 0x3a6   :  { %563 = vrot.lane.b32.xlu0 %v1779_v24, %s1621_s27 }
 0x3d5   :  { %v393_v4 = vpop.xlane.xlu0 %392 }
 0x3d6   :  { %1583 = vrcp.f32 %v393_v4 }
 0x3dc   :  { %v1584_v6 = vpop.eup %1583 }
 0x3dd   :  { %v396_v5 = vpop.xlane.xlu1 %395  ;;  %v407_v8 = vmul.f32 %v1584_v6, %v1576_v55 }
 0x3de   :  { %1585 = vrcp.f32 %v396_v5 }
 0x3e4   :  { %v1586_v7 = vpop.eup %1585 }
 0x3e5   :  { %v408_v9 = vmul.f32 %v1586_v7, %v1578_v60  ;;  %v399_v11 = vpop.xlane.xlu2 %398 }
 0x3e6   :  { %1587 = vrcp.f32 %v399_v11 }
 0x3e7   :  { %v411_v10 = vpack.c.bf16 %v408_v9, %v407_v8 }
 0x3e9   :  { %1329 = vmatmul.msk.bf16.vlgmr.msrb.gmra.mxu2 %vm366_vm15, %v411_v10 }
 0x3ec   :  { %v1588_v14 = vpop.eup %1587 }
 0x3ed   :  { %v402_v13 = vpop.xlane.xlu0 %401  ;;  %v409_v17 = vmul.f32 %v1588_v14, %v1580_v0  ;;  %v536_v41 = vpop.permute.xlu2 %535 }
 0x3ee   :  { %1589 = vrcp.f32 %v402_v13  ;;  %v570_v53 = vsel %vm136_vm1, %v1765_v16, %v536_v41  ;;  %v1529_v41 = vld [vmem:[%s2191_s13 + $0x24] sm:$0xf0] }
 0x3f4   :  { %v1590_v15 = vpop.eup %1589 }
 0x3f5   :  { %v410_v18 = vmul.f32 %v1590_v15, %v1582_v2  ;;  %v534_v43 = vpop.permute.xlu1 %533  ;;  %v548_v46 = vpop.permute.xlu2 %547 }
 0x3f6   :  { %v569_v49 = vsel %vm136_vm1, %v1758_v12, %v534_v43  ;;  %v574_v55 = vsel %vm366_vm15, %v570_v53, %v548_v46 }
 0x3f7   :  { %v412_v19 = vpack.c.bf16 %v410_v18, %v409_v17 }
 0x3f9   :  { %1330 = vmatmul.msk.bf16.gmra.mxu2 %vm366_vm15, %v412_v19 }
 0x3fd   :  { %v558_v48 = vpop.permute.xlu1 %557  ;;  %v538_v12 = vpop.permute.xlu2 %537 }
 0x3fe   :  { %v571_v63 = vsel %vm136_vm1, %v1772_v20, %v538_v12  ;;  %v1387_v12 = vld [vmem:[%s2191_s13 + $0x8] sm:$0xf0] }
 0x400   :  { %v546_v42 = vpop.permute.xlu0 %545 }
 0x401   :  { %v573_v51 = vsel %vm366_vm15, %v569_v49, %v546_v42  ;;  %v1528_v42 = vld [vmem:[%s2191_s13 + $0x24] sm:$0xf] }
 0x402   :  { %v578_v58 = vsel %vm577_vm2, %v573_v51, %v558_v48  ;;  %v1526_v48 = vld [vmem:[%s2191_s13 + $0x14] sm:$0xf]  ;;  %v1395_v51 = vld [vmem:[%s2191_s13 + $0x18] sm:$0xf0] }
 0x405   :  { %v540_v62 = vpop.permute.xlu1 %539  ;;  %v552_v0 = vpop.permute.xlu2 %551 }
 0x406   :  { %v572_v1 = vsel %vm136_vm1, %v1779_v24, %v540_v62 }
 0x407   :  { %v576_v6 = vsel %vm366_vm15, %v572_v1, %v552_v0 }
 0x408   :  { %v560_v47 = vpop.permute.xlu0 %559 }
 0x409   :  { %v579_v57 = vsel %vm577_vm2, %v574_v55, %v560_v47  ;;  %v1393_v47 = vld [vmem:[%s2191_s13 + $0x10] sm:$0xf]  ;;  %v1525_v55 = vld [vmem:[%s2191_s13 + $0x4] sm:$0xf0] }
 0x40d   :  { %v562_v5 = vpop.permute.xlu1 %561 }
 0x410   :  { %v550_v61 = vpop.permute.xlu0 %549 }
 0x411   :  { %v575_v50 = vsel %vm366_vm15, %v571_v63, %v550_v61 }
 0x412   :  { %v580_v9 = vsel %vm577_vm2, %v575_v50, %v562_v5 }
 0x418   :  { %v564_v2 = vpop.permute.xlu0 %563 }
 0x419   :  { %v581_v8 = vsel %vm577_vm2, %v576_v6, %v564_v2 }
 0x46c   :  { %v430_v30 = vpop.f32.mrf.mxu2 }
 0x474   :  { %v432_v31 = vpop.f32.mrf.mxu2 }
 0x475   :  { %v456_v33 = vpack.c.bf16 %v432_v31, %v430_v30  ;;  %v1531_v30 = vld [vmem:[%s2191_s13 + $0x34] sm:$0xf0]  ;;  %v1530_v31 = vld [vmem:[%s2191_s13 + $0x34] sm:$0xf] }
 0x477   :  { %518 = vmatmul.bf16.vlgmr.msrb.gmra.mxu3 %v456_v33  ;;  %v1410_v33 = vor.u32 %v1531_v30, %v1409_v29  ;;  %v1561_v29 = vld [vmem:[%s2190_s12] ss:$0 sm:$0xff] }
 0x479   :  { %806 = vmatpush.bf16.msra.mxu2 %v1410_v33 }
 0x47c   :  { %v435_v34 = vpop.f32.mrf.mxu2 }
 0x484   :  { %v437_v32 = vpop.f32.mrf.mxu2 }
 0x485   :  { %v457_v36 = vpack.c.bf16 %v437_v32, %v435_v34  ;;  %v1411_v34 = vld [vmem:[%s2191_s13 + $0x38] sm:$0xf0] }
 0x486   :  { %v1414_v32 = vor.u32 %v1530_v31, %v1411_v34 }
 0x487   :  { %523 = vmatmul.bf16.gmra.mxu3 %v457_v36  ;;  %v1401_v36 = vld [vmem:[%s2191_s13 + $0x20] sm:$0xf] }
 0x488   :  { %825 = vmatpush.bf16.msra.mxu3 %v1414_v32  ;;  %v1402_v43 = vor.u32 %v1529_v41, %v1401_v36 }
 0x48a   :  { %807 = vmatpush.bf16.msra.mxu2 %v1402_v43 }
 0x4fa   :  { %v519_v44 = vpop.f32.mrf.mxu3 }
 0x4fb   :  { %v520_v52 = vadd.f32 %v1559_v40, %v519_v44  ;;  %v1403_v44 = vld [vmem:[%s2191_s13 + $0x28] sm:$0xf0] }
 0x4fc   :  { %v1406_v46 = vor.u32 %v1528_v42, %v1403_v44 }
 0x4fd   :  { %v1951_v59 = vadd.f32 %v578_v58, %v520_v52  ;;  %v1398_v52 = vor.u32 %v1526_v48, %v1395_v51 }
 0x4fe   :  { %826 = vmatpush.bf16.msra.mxu3 %v1406_v46 }
 0x502   :  { %v521_v54 = vpop.f32.mrf.mxu3  ;;  %827 = vmatpush.bf16.msra.mxu3 %v1398_v52 }
 0x503   :  { %v522_v56 = vadd.f32 %v1559_v40, %v521_v54  ;;  %v1385_v54 = vld [vmem:[%s2191_s13] sm:$0xf] }
 0x504   :  { %v1386_v58 = vor.u32 %v1525_v55, %v1385_v54 }
 0x505   :  { %v1953_v60 = vadd.f32 %v579_v57, %v522_v56  ;;  %v1524_v56 = vld [vmem:[%s2191_s13 + $0x4] sm:$0xf] }
 0x506   :  { %v1390_v61 = vor.u32 %v1524_v56, %v1387_v12  ;;  %v1537_v12 = vld [vmem:[%s2193_s15 + $0x28] sm:$0xff] }
 0x507   :  { %v594_v45 = vpack.c.bf16 %v1953_v60, %v1951_v59 }
 0x508   :  { %828 = vmatpush.bf16.msra.mxu3 %v1390_v61  ;;  %v1545_v61 = vld [vmem:[%s2193_s15 + $0x68] sm:$0xff] }
 0x509   :  { %1379 = vmatmul.msk.bf16.vlgmr.msrb.gmra.mxu0 %vm108_vm0, %v594_v45 }
 0x50a   :  { %v524_v16 = vpop.f32.mrf.mxu3 }
 0x50b   :  { %v525_v3 = vadd.f32 %v1559_v40, %v524_v16 }
 0x50c   :  { %1161 = vmatpush.bf16.msrb.mxu3 %v1915_v35 }
 0x50d   :  { %v1966_v10 = vadd.f32 %v580_v9, %v525_v3 }
 0x510   :  { %1162 = vmatpush.bf16.msrb.mxu3 %v1922_v37 }
 0x512   :  { %v526_v4 = vpop.f32.mrf.mxu3 }
 0x513   :  { %v527_v7 = vadd.f32 %v1559_v40, %v526_v4  ;;  %v1527_v40 = vld [vmem:[%s2191_s13 + $0x14] sm:$0xf0] }
 0x514   :  { %v1394_v49 = vor.u32 %v1527_v40, %v1393_v47  ;;  %1163 = vmatpush.bf16.msrb.mxu3 %v1929_v38 }
 0x515   :  { %v1968_v20 = vadd.f32 %v581_v8, %v527_v7 }
 0x516   :  { %808 = vmatpush.bf16.msra.mxu2 %v1394_v49 }
 0x517   :  { %v595_v24 = vpack.c.bf16 %v1968_v20, %v1966_v10 }
 0x518   :  { %1164 = vmatpush.bf16.msrb.mxu3 %v1936_v39 }
 0x519   :  { %1380 = vmatmul.msk.bf16.gmra.mxu0 %vm108_vm0, %v595_v24 }
 0x51a   :  { %809 = vmatpush.bf16.msra.mxu2 %v1386_v58  ;;  %v1546_v58 = vld [vmem:[%s2193_s15 + $0x70] sm:$0xff] }
 0x586   :  { %v635_v11 = vpop.f32.mrf.mxu0 }
 0x587   :  { %v1974_v13 = vsub.f32 %v1951_v59, %v635_v11 }
 0x589   :  { %v649_v17 = vmul.f32 %v1974_v13, %v1974_v13 }
 0x58e   :  { %v637_v14 = vpop.f32.mrf.mxu0 }
 0x58f   :  { %v1977_v15 = vsub.f32 %v1953_v60, %v637_v14 }
 0x591   :  { %v650_v18 = vmul.f32 %v1977_v15, %v1977_v15 }
 0x593   :  { %v653_v19 = vpack.c.bf16 %v650_v18, %v649_v17  ;;  %v1560_v18 = vld [vmem:[%s2189_s11] ss:$0 sm:$0xff] }
 0x595   :  { %1381 = vmatmul.msk.bf16.vlgmr.msra.gmra.mxu1 %vm108_vm0, %v653_v19 }
 0x596   :  { %v640_v21 = vpop.f32.mrf.mxu0 }
 0x597   :  { %v1985_v22 = vsub.f32 %v1966_v10, %v640_v21 }
 0x599   :  { %v651_v26 = vmul.f32 %v1985_v22, %v1985_v22 }
 0x59e   :  { %v642_v23 = vpop.f32.mrf.mxu0 }
 0x59f   :  { %v1988_v25 = vsub.f32 %v1968_v20, %v642_v23 }
 0x5a1   :  { %v652_v27 = vmul.f32 %v1988_v25, %v1988_v25 }
 0x5a3   :  { %v654_v28 = vpack.c.bf16 %v652_v27, %v651_v26 }
 0x5a5   :  { %1382 = vmatmul.msk.bf16.gmra.mxu1 %vm108_vm0, %v654_v28 }
 0x612   :  { %v670_v53 = vpop.f32.mrf.mxu1 }
 0x613   :  { %v671_v57 = vadd.f32 1e-05, %v670_v53 }
 0x615   :  { %1591 = vrsqrt.f32 %v671_v57  ;;  %vm686_vm3 = vweird.f32 %v671_v57 }
 0x61a   :  { %v672_v45 = vpop.f32.mrf.mxu1 }
 0x61b   :  { %v1592_v62 = vpop.eup %1591  ;;  %v673_v16 = vadd.f32 1e-05, %v672_v45  ;;  %v1536_v45 = vld [vmem:[%s2193_s15 + $0x20] sm:$0xff] }
 0x61c   :  { %v681_v63 = vmul.f32 %v1592_v62, %v671_v57  ;;  %vm687_vm1 = vweird.f32 %v1592_v62  ;;  %v1539_v57 = vld [vmem:[%s2193_s15 + $0x38] sm:$0xff] }
 0x61d   :  { %1593 = vrsqrt.f32 %v673_v16  ;;  %vm688_vm4 = vmor %vm686_vm3, %vm687_vm1  ;;  %vm696_vm6 = vweird.f32 %v673_v16  ;;  %1048 = vmatpush.bf16.msra.mxu0 %v1539_v57 }
 0x61e   :  { %v682_v0 = vmul.f32 %v1592_v62, %v681_v63  ;;  %v1543_v63 = vld [vmem:[%s2193_s15 + $0x58] sm:$0xff] }
 0x620   :  { %v683_v1 = vmul.f32 0.5, %v682_v0  ;;  %v1534_v0 = vld [vmem:[%s2193_s15 + $0x10] sm:$0xff] }
 0x622   :  { %v684_v50 = vsub.f32 1.5, %v683_v1  ;;  %v675_v2 = vpop.f32.mrf.mxu1  ;;  %v1542_v1 = vld [vmem:[%s2193_s15 + $0x50] sm:$0xff] }
 0x623   :  { %v1594_v3 = vpop.eup %1593  ;;  %v676_v4 = vadd.f32 1e-05, %v675_v2  ;;  %v1533_v2 = vld [vmem:[%s2193_s15 + $0x8] sm:$0xff] }
 0x624   :  { %v685_v5 = vmul.f32 %v1592_v62, %v684_v50  ;;  %v691_v6 = vmul.f32 %v1594_v3, %v673_v16  ;;  %vm697_vm5 = vweird.f32 %v1594_v3  ;;  %v1535_v16 = vld [vmem:[%s2193_s15 + $0x18] sm:$0xff]  ;;  %v750_v50 = vld [vmem:[%s2194_s14] sm:$0x3] }
 0x625   :  { %1595 = vrsqrt.f32 %v676_v4  ;;  %vm698_vm7 = vmor %vm696_vm6, %vm697_vm5  ;;  %vm706_vm9 = vweird.f32 %v676_v4 }
 0x626   :  { %v692_v7 = vmul.f32 %v1594_v3, %v691_v6  ;;  %v689_v8 = vsel %vm688_vm4, %v1592_v62, %v685_v5  ;;  %v1544_v62 = vld [vmem:[%s2193_s15 + $0x60] sm:$0xff]  ;;  %v752_v6 = vperm.slane %v750_v50, 0 }
 0x627   :  { %v720_v17 = vmul.f32 %v689_v8, %v1974_v13  ;;  %v1540_v5 = vld [vmem:[%s2193_s15 + $0x40] sm:$0xff] }
 0x628   :  { %v693_v9 = vmul.f32 0.5, %v692_v7  ;;  %v753_v7 = vperm.slane %v750_v50, 1 }
 0x629   :  { %v728_v28 = vmul.f32 %v1560_v18, %v720_v17 }
 0x62a   :  { %v694_v24 = vsub.f32 1.5, %v693_v9  ;;  %v677_v11 = vpop.f32.mrf.mxu1 }
 0x62b   :  { %v1596_v14 = vpop.eup %1595  ;;  %v678_v19 = vadd.f32 1e-05, %v677_v11  ;;  %v736_v32 = vadd.f32 %v1561_v29, %v728_v28 }
 0x62c   :  { %v695_v21 = vmul.f32 %v1594_v3, %v694_v24  ;;  %v701_v23 = vmul.f32 %v1596_v14, %v676_v4  ;;  %vm707_vm8 = vweird.f32 %v1596_v14  ;;  %v1532_v4 = vld [vmem:[%s2193_s15] sm:$0xff] }
 0x62d   :  { %1597 = vrsqrt.f32 %v678_v19  ;;  %vm708_vm10 = vmor %vm706_vm9, %vm707_vm8  ;;  %vm716_vm12 = vweird.f32 %v678_v19 }
 0x62e   :  { %v699_v26 = vsel %vm698_vm7, %v1594_v3, %v695_v21  ;;  %v702_v27 = vmul.f32 %v1596_v14, %v701_v23  ;;  %v1541_v3 = vld [vmem:[%s2193_s15 + $0x48] sm:$0xff] }
 0x62f   :  { %v721_v30 = vmul.f32 %v699_v26, %v1977_v15 }
 0x630   :  { %v703_v13 = vmul.f32 0.5, %v702_v27 }
 0x631   :  { %v729_v31 = vmul.f32 %v1560_v18, %v721_v30 }
 0x632   :  { %v704_v33 = vsub.f32 1.5, %v703_v13 }
 0x633   :  { %v1598_v34 = vpop.eup %1597  ;;  %v737_v36 = vadd.f32 %v1561_v29, %v729_v31 }
 0x634   :  { %v705_v41 = vmul.f32 %v1596_v14, %v704_v33  ;;  %v711_v42 = vmul.f32 %v1598_v34, %v678_v19  ;;  %vm717_vm11 = vweird.f32 %v1598_v34 }
 0x635   :  { %v748_v43 = vpack.c.bf16 %v737_v36, %v736_v32  ;;  %vm718_vm13 = vmor %vm716_vm12, %vm717_vm11 }
 0x636   :  { %v712_v44 = vmul.f32 %v1598_v34, %v711_v42  ;;  %v709_v46 = vsel %vm708_vm10, %v1596_v14, %v705_v41 }
 0x637   :  { %1415 = vmatmul.msk.bf16.vlgmr.msra.gmra.mxu2 %vm108_vm0, %v748_v43  ;;  %1417 = vmatmul.msk.bf16.vlgmr.msra.gmra.mxu3 %vm108_vm0, %v748_v43  ;;  %v722_v40 = vmul.f32 %v709_v46, %v1985_v22  ;;  %v1547_v22 = vld [vmem:[%s2193_s15 + $0x78] sm:$0xff] }
 0x638   :  { %v713_v47 = vmul.f32 0.5, %v712_v44  ;;  %1067 = vmatpush.bf16.msrb.mxu1 %v1547_v22 }
 0x639   :  { %v730_v52 = vmul.f32 %v1560_v18, %v722_v40 }
 0x63a   :  { %v714_v15 = vsub.f32 1.5, %v713_v47 }
 0x63b   :  { %v738_v54 = vadd.f32 %v1561_v29, %v730_v52 }
 0x63c   :  { %v715_v48 = vmul.f32 %v1598_v34, %v714_v15  ;;  %1068 = vmatpush.bf16.msrb.mxu1 %v1546_v58 }
 0x63e   :  { %v719_v49 = vsel %vm718_vm13, %v1598_v34, %v715_v48 }
 0x63f   :  { %v723_v51 = vmul.f32 %v719_v49, %v1988_v25  ;;  %v1538_v25 = vld [vmem:[%s2193_s15 + $0x30] sm:$0xff] }
 0x640   :  { %1049 = vmatpush.bf16.msra.mxu0 %v1538_v25  ;;  %1069 = vmatpush.bf16.msrb.mxu1 %v1545_v61 }
 0x641   :  { %v731_v53 = vmul.f32 %v1560_v18, %v723_v51 }
 0x643   :  { %v739_v55 = vadd.f32 %v1561_v29, %v731_v53 }
 0x644   :  { %1050 = vmatpush.bf16.msra.mxu0 %v1537_v12  ;;  %1070 = vmatpush.bf16.msrb.mxu1 %v1544_v62 }
 0x645   :  { %v749_v56 = vpack.c.bf16 %v739_v55, %v738_v54 }
 0x647   :  { %1416 = vmatmul.msk.bf16.gmra.mxu2 %vm108_vm0, %v749_v56  ;;  %1418 = vmatmul.msk.bf16.gmra.mxu3 %vm108_vm0, %v749_v56 }
 0x648   :  { %1051 = vmatpush.bf16.msra.mxu0 %v1536_v45  ;;  %1071 = vmatpush.bf16.msrb.mxu1 %v1543_v63 }
 0x64c   :  { %1052 = vmatpush.bf16.msra.mxu0 %v1535_v16  ;;  %1072 = vmatpush.bf16.msrb.mxu1 %v1542_v1 }
 0x650   :  { %1053 = vmatpush.bf16.msra.mxu0 %v1534_v0  ;;  %1073 = vmatpush.bf16.msrb.mxu1 %v1541_v3 }
 0x654   :  { %1054 = vmatpush.bf16.msra.mxu0 %v1533_v2  ;;  %1074 = vmatpush.bf16.msrb.mxu1 %v1540_v5 }
 0x658   :  { %1055 = vmatpush.bf16.msra.mxu0 %v1532_v4 }
 0x65c   :  { %1217 = vmatpush.bf16.msrb.mxu0 %v1915_v35 }
 0x660   :  { %1218 = vmatpush.bf16.msrb.mxu0 %v1922_v37 }
 0x664   :  { %1219 = vmatpush.bf16.msrb.mxu0 %v1929_v38 }
 0x668   :  { %1220 = vmatpush.bf16.msrb.mxu0 %v1936_v39 }
 0x6ba   :  { %v811_v8 = vpop.f32.mrf.mxu2  ;;  %v830_v9 = vpop.f32.mrf.mxu3 }
 0x6bb   :  { %v812_v24 = vadd.f32 %v811_v8, %v752_v6  ;;  %v831_v11 = vadd.f32 %v830_v9, %v753_v7 }
 0x6bd   :  { %v848_v14 = vmul.f32 0.044715, %v812_v24  ;;  %v849_v17 = vmul.f32 0.044715, %v831_v11  ;;  %v840_v63 = vmul.f32 0.5, %v812_v24  ;;  %v841_v3 = vmul.f32 0.5, %v831_v11 }
 0x6bf   :  { %v856_v18 = vmul.f32 %v848_v14, %v812_v24  ;;  %v857_v19 = vmul.f32 %v849_v17, %v831_v11 }
 0x6c1   :  { %v864_v21 = vmul.f32 %v856_v18, %v812_v24  ;;  %v865_v23 = vmul.f32 %v857_v19, %v831_v11 }
 0x6c2   :  { %v813_v26 = vpop.f32.mrf.mxu2  ;;  %v832_v27 = vpop.f32.mrf.mxu3 }
 0x6c3   :  { %v872_v28 = vadd.f32 %v864_v21, %v812_v24  ;;  %v814_v29 = vadd.f32 %v813_v26, %v752_v6  ;;  %v833_v30 = vadd.f32 %v832_v27, %v753_v7  ;;  %v873_v13 = vadd.f32 %v865_v23, %v831_v11 }
 0x6c5   :  { %v850_v31 = vmul.f32 0.044715, %v814_v29  ;;  %v851_v33 = vmul.f32 0.044715, %v833_v30  ;;  %v880_v34 = vmul.f32 0.7978846, %v872_v28 }
 0x6c6   :  { %v881_v32 = vmul.f32 0.7978846, %v873_v13  ;;  %v842_v50 = vmul.f32 0.5, %v814_v29  ;;  %v843_v4 = vmul.f32 0.5, %v833_v30 }
 0x6c7   :  { %v858_v35 = vmul.f32 %v850_v31, %v814_v29  ;;  %v859_v36 = vmul.f32 %v851_v33, %v833_v30  ;;  %1599 = vtanh.f32 %v880_v34 }
 0x6c8   :  { %1601 = vtanh.f32 %v881_v32 }
 0x6c9   :  { %v866_v41 = vmul.f32 %v858_v35, %v814_v29  ;;  %v867_v37 = vmul.f32 %v859_v36, %v833_v30 }
 0x6ca   :  { %v816_v42 = vpop.f32.mrf.mxu2  ;;  %v835_v43 = vpop.f32.mrf.mxu3 }
 0x6cb   :  { %v874_v44 = vadd.f32 %v866_v41, %v814_v29  ;;  %v817_v46 = vadd.f32 %v816_v42, %v752_v6  ;;  %v2116_v47 = vadd.f32 %v835_v43, %v753_v7  ;;  %v875_v15 = vadd.f32 %v867_v37, %v833_v30 }
 0x6cd   :  { %v882_v38 = vmul.f32 0.7978846, %v874_v44  ;;  %v852_v40 = vmul.f32 0.044715, %v817_v46  ;;  %v853_v48 = vmul.f32 0.044715, %v2116_v47  ;;  %v1600_v52 = vpop.eup %1599 }
 0x6ce   :  { %v883_v49 = vmul.f32 0.7978846, %v875_v15  ;;  %v1602_v55 = vpop.eup %1601  ;;  %v896_v12 = vadd.f32 1.0, %v1600_v52  ;;  %v844_v32 = vmul.f32 0.5, %v817_v46  ;;  %v845_v37 = vmul.f32 0.5, %v2116_v47 }
 0x6cf   :  { %1603 = vtanh.f32 %v882_v38  ;;  %v860_v39 = vmul.f32 %v852_v40, %v817_v46  ;;  %v861_v51 = vmul.f32 %v853_v48, %v2116_v47  ;;  %v897_v0 = vadd.f32 1.0, %v1602_v55 }
 0x6d0   :  { %1605 = vtanh.f32 %v883_v49 }
 0x6d1   :  { %v868_v53 = vmul.f32 %v860_v39, %v817_v46  ;;  %v869_v54 = vmul.f32 %v861_v51, %v2116_v47  ;;  %v905_v18 = vmul.f32 %v897_v0, %v841_v3  ;;  %v1551_v39 = vld [vmem:[%s2195_s17 + $0x18] sm:$0xff]  ;;  %v1548_v51 = vld [vmem:[%s2195_s17] sm:$0xff] }
 0x6d2   :  { %v818_v56 = vpop.f32.mrf.mxu2  ;;  %v837_v57 = vpop.f32.mrf.mxu3  ;;  %1134 = vmatpush.bf16.msrb.mxu2 %v1551_v39 }
 0x6d3   :  { %v819_v22 = vadd.f32 %v818_v56, %v752_v6  ;;  %v838_v25 = vadd.f32 %v837_v57, %v753_v7  ;;  %v876_v58 = vadd.f32 %v868_v53, %v817_v46  ;;  %v877_v61 = vadd.f32 %v869_v54, %v2116_v47  ;;  %v1550_v46 = vld [vmem:[%s2195_s17 + $0x10] sm:$0xff]  ;;  %v1549_v47 = vld [vmem:[%s2195_s17 + $0x8] sm:$0xff]  ;;  %v1562_v53 = vld [vmem:[%s2192_s16] ss:$0 sm:$0xff] }
 0x6d4   :  { %v904_v6 = vmul.f32 %v896_v12, %v840_v63 }
 0x6d5   :  { %v1604_v45 = vpop.eup %1603  ;;  %v854_v62 = vmul.f32 0.044715, %v819_v22  ;;  %v855_v16 = vmul.f32 0.044715, %v838_v25  ;;  %v884_v9 = vmul.f32 0.7978846, %v876_v58 }
 0x6d6   :  { %v1606_v1 = vpop.eup %1605  ;;  %v898_v2 = vadd.f32 1.0, %v1604_v45  ;;  %v885_v17 = vmul.f32 0.7978846, %v877_v61  ;;  %v846_v36 = vmul.f32 0.5, %v819_v22  ;;  %v847_v42 = vmul.f32 0.5, %v838_v25  ;;  %1135 = vmatpush.bf16.msrb.mxu2 %v1550_v46 }
 0x6d7   :  { %v899_v5 = vadd.f32 1.0, %v1606_v1  ;;  %v862_v8 = vmul.f32 %v854_v62, %v819_v22  ;;  %v863_v14 = vmul.f32 %v855_v16, %v838_v25  ;;  %1607 = vtanh.f32 %v884_v9 }
 0x6d8   :  { %v906_v7 = vmul.f32 %v898_v2, %v842_v50  ;;  %1609 = vtanh.f32 %v885_v17 }
 0x6d9   :  { %v907_v19 = vmul.f32 %v899_v5, %v843_v4  ;;  %v870_v21 = vmul.f32 %v862_v8, %v819_v22  ;;  %v871_v23 = vmul.f32 %v863_v14, %v838_v25 }
 0x6da   :  { %v944_v26 = vpack.c.bf16 %v906_v7, %v904_v6  ;;  %1136 = vmatpush.bf16.msrb.mxu2 %v1549_v47 }
 0x6db   :  { %v945_v27 = vpack.c.bf16 %v907_v19, %v905_v18  ;;  %v878_v24 = vadd.f32 %v870_v21, %v819_v22  ;;  %v879_v28 = vadd.f32 %v871_v23, %v838_v25  ;;  %v1623_v19 = vmov 32.0  }
 0x6dc   :  { %1056 = vmatmul.bf16.vlgmr.msra.gmra.mxu0 %v944_v26 }
 0x6dd   :  { %1075 = vmatmul.bf16.vlgmr.msrb.gmra.mxu1 %v945_v27  ;;  %v886_v11 = vmul.f32 0.7978846, %v878_v24  ;;  %v887_v29 = vmul.f32 0.7978846, %v879_v28  ;;  %v1608_v30 = vpop.eup %1607 }
 0x6de   :  { %v1610_v13 = vpop.eup %1609  ;;  %v900_v31 = vadd.f32 1.0, %v1608_v30  ;;  %1137 = vmatpush.bf16.msrb.mxu2 %v1548_v51 }
 0x6df   :  { %1611 = vtanh.f32 %v886_v11  ;;  %v901_v34 = vadd.f32 1.0, %v1610_v13 }
 0x6e0   :  { %1613 = vtanh.f32 %v887_v29  ;;  %v908_v44 = vmul.f32 %v900_v31, %v844_v32 }
 0x6e1   :  { %v909_v38 = vmul.f32 %v901_v34, %v845_v37  ;;  %1615 = vrcp.f32 %v1623_v19  ;;  %v1564_v19 = vld [vmem:[%s2197_s19] ss:$0 sm:$0xff] }
 0x6e5   :  { %v1612_v33 = vpop.eup %1611 }
 0x6e6   :  { %v1614_v35 = vpop.eup %1613  ;;  %v902_v41 = vadd.f32 1.0, %v1612_v33 }
 0x6e7   :  { %v903_v43 = vadd.f32 1.0, %v1614_v35  ;;  %v1616_v21 = vpop.eup %1615 }
 0x6e8   :  { %v910_v15 = vmul.f32 %v902_v41, %v846_v36  ;;  %v1190_v27 = vmul.f32 32.0, %v1616_v21  ;;  %vm1194_vm14 = vweird.f32 %v1616_v21 }
 0x6e9   :  { %v911_v40 = vmul.f32 %v903_v43, %v847_v42 }
 0x6ea   :  { %v946_v48 = vpack.c.bf16 %v910_v15, %v908_v44  ;;  %v1191_v30 = vsub.f32 1.0, %v1190_v27 }
 0x6eb   :  { %v947_v49 = vpack.c.bf16 %v911_v40, %v909_v38 }
 0x6ec   :  { %1061 = vmatmul.bf16.gmra.mxu0 %v946_v48  ;;  %v1192_v33 = vmul.f32 %v1616_v21, %v1191_v30 }
 0x6ed   :  { %1080 = vmatmul.bf16.gmra.mxu1 %v947_v49 }
 0x6ee   :  { %v1193_v32 = vadd.f32 %v1616_v21, %v1192_v33 }
 0x6f0   :  { %v1195_v37 = vsel %vm1194_vm14, %v1616_v21, %v1193_v32 }
 0x759   :  { %v1057_v52 = vpop.f32.mrf.mxu0 }
 0x75a   :  { %v1076_v54 = vpop.f32.mrf.mxu1  ;;  %v1058_v55 = vadd.f32 %v1562_v53, %v1057_v52 }
 0x75c   :  { %v1077_v57 = vadd.f32 %v1076_v54, %v1058_v55 }
 0x75e   :  { %v1086_v12 = vadd.f32 %v1077_v57, %v1951_v59 }
 0x761   :  { %v1059_v56 = vpop.f32.mrf.mxu0 }
 0x762   :  { %v1060_v22 = vadd.f32 %v1562_v53, %v1059_v56  ;;  %v1078_v25 = vpop.f32.mrf.mxu1 }
 0x764   :  { %v1079_v58 = vadd.f32 %v1078_v25, %v1060_v22 }
 0x766   :  { %v1087_v61 = vadd.f32 %v1079_v58, %v1953_v60 }
 0x768   :  { %v1098_v45 = vpack.c.bf16 %v1087_v61, %v1086_v12 }
 0x769   :  { %v1062_v62 = vpop.f32.mrf.mxu0 }
 0x76a   :  { %v1081_v16 = vpop.f32.mrf.mxu1  ;;  %1499 = vmatmul.msk.bf16.vlgmr.msrb.gmra.mxu2 %vm108_vm0, %v1098_v45  ;;  %v1063_v63 = vadd.f32 %v1562_v53, %v1062_v62 }
 0x76c   :  { %v1082_v1 = vadd.f32 %v1081_v16, %v1063_v63 }
 0x76e   :  { %v1088_v4 = vadd.f32 %v1082_v1, %v1966_v10 }
 0x771   :  { %v1064_v0 = vpop.f32.mrf.mxu0 }
 0x772   :  { %v1065_v50 = vadd.f32 %v1562_v53, %v1064_v0  ;;  %v1083_v2 = vpop.f32.mrf.mxu1 }
 0x774   :  { %v1084_v3 = vadd.f32 %v1083_v2, %v1065_v50 }
 0x776   :  { %v1089_v5 = vadd.f32 %v1084_v3, %v1968_v20 }
 0x778   :  { %v1099_v8 = vpack.c.bf16 %v1089_v5, %v1088_v4 }
 0x77a   :  { %1500 = vmatmul.msk.bf16.gmra.mxu2 %vm108_vm0, %v1099_v8 }
 0x7ed   :  { %v1139_v59 = vpop.f32.mrf.mxu2 }
 0x7f5   :  { %v1141_v60 = vpop.f32.mrf.mxu2 }
 0x7f6   :  { %v1149_v9 = vpack.c.bf16 %v1141_v60, %v1139_v59 }
 0x7f8   :  { %1501 = vmatmul.msk.bf16.vlgmr.msrb.gmra.mxu3 %vm108_vm0, %v1149_v9  ;;  %v1563_v9 = vld [vmem:[%s2196_s18] ss:$0 sm:$0xff] }
 0x7fd   :  { %v1144_v14 = vpop.f32.mrf.mxu2 }
 0x805   :  { %v1146_v6 = vpop.f32.mrf.mxu2 }
 0x806   :  { %v1150_v7 = vpack.c.bf16 %v1146_v6, %v1144_v14 }
 0x808   :  { %1502 = vmatmul.msk.bf16.gmra.mxu3 %vm108_vm0, %v1150_v7 }
 0x87b   :  { %v1166_v17 = vpop.f32.mrf.mxu3 }
 0x87c   :  { %v1176_v23 = vsel %vm108_vm0, %v1166_v17, 0.0 }
 0x883   :  { %v1168_v18 = vpop.f32.mrf.mxu3 }
 0x884   :  { %v1177_v20 = vsel %vm108_vm0, %v1168_v18, 0.0 }
 0x885   :  { %v1178_v24 = vadd.f32 %v1177_v20, %v1176_v23 }
 0x88b   :  { %v1171_v10 = vpop.f32.mrf.mxu3 }
 0x88c   :  { %v1179_v26 = vsel %vm108_vm0, %v1171_v10, 0.0 }
 0x88d   :  { %v1180_v28 = vadd.f32 %v1179_v26, %v1178_v24 }
 0x893   :  { %v1173_v11 = vpop.f32.mrf.mxu3 }
 0x894   :  { %v1181_v29 = vsel %vm108_vm0, %v1173_v11, 0.0 }
 0x895   :  { %v1182_v13 = vadd.f32 %v1181_v29, %v1180_v28 }
 0x897   :  { %v1183_v31 = vrot.slane %v1182_v13, 4 }
 0x899   :  { %v1184_v34 = vadd.f32 %v1183_v31, %v1182_v13 }
 0x89b   :  { %v1185_v35 = vrot.slane %v1184_v34, 2 }
 0x89d   :  { %v1186_v36 = vadd.f32 %v1185_v35, %v1184_v34 }
 0x89f   :  { %v1187_v41 = vrot.slane %v1186_v36, 1 }
 0x8a1   :  { %v1188_v42 = vadd.f32 %v1187_v41, %v1186_v36 }
 0x8a3   :  { %v1196_v43 = vmul.f32 %v1195_v37, %v1188_v42 }
 0x8a5   :  { %v1197_v44 = vsub.f32 %v1139_v59, %v1196_v43  ;;  %v1198_v15 = vsub.f32 %v1141_v60, %v1196_v43  ;;  %v1199_v49 = vsub.f32 %v1144_v14, %v1196_v43  ;;  %v1200_v39 = vsub.f32 %v1146_v6, %v1196_v43 }
 0x8a7   :  { %v1201_v38 = vmul.f32 %v1197_v44, %v1197_v44  ;;  %v1202_v40 = vmul.f32 %v1198_v15, %v1198_v15  ;;  %v1203_v46 = vmul.f32 %v1199_v49, %v1199_v49  ;;  %v1204_v47 = vmul.f32 %v1200_v39, %v1200_v39 }
 0x8a9   :  { %v1205_v48 = vpack.c.bf16 %v1202_v40, %v1201_v38  ;;  %v1206_v51 = vpack.c.bf16 %v1204_v47, %v1203_v46 }
 0x8ab   :  { %1503 = vmatmul.msk.bf16.vlgmr.msrb.gmra.mxu0 %vm108_vm0, %v1205_v48 }
 0x8bb   :  { %1504 = vmatmul.msk.bf16.gmra.mxu0 %vm108_vm0, %v1206_v51 }
 0x928   :  { %v1222_v52 = vpop.f32.mrf.mxu0 }
 0x929   :  { %v1232_v56 = vsel %vm108_vm0, %v1222_v52, 0.0 }
 0x930   :  { %v1224_v53 = vpop.f32.mrf.mxu0 }
 0x931   :  { %v1233_v55 = vsel %vm108_vm0, %v1224_v53, 0.0 }
 0x932   :  { %v1234_v22 = vadd.f32 %v1233_v55, %v1232_v56 }
 0x938   :  { %v1227_v54 = vpop.f32.mrf.mxu0 }
 0x939   :  { %v1235_v57 = vsel %vm108_vm0, %v1227_v54, 0.0 }
 0x93a   :  { %v1236_v25 = vadd.f32 %v1235_v57, %v1234_v22 }
 0x940   :  { %v1229_v58 = vpop.f32.mrf.mxu0 }
 0x941   :  { %v1237_v12 = vsel %vm108_vm0, %v1229_v58, 0.0 }
 0x942   :  { %v1238_v61 = vadd.f32 %v1237_v12, %v1236_v25 }
 0x944   :  { %v1239_v45 = vrot.slane %v1238_v61, 4 }
 0x946   :  { %v1240_v62 = vadd.f32 %v1239_v45, %v1238_v61 }
 0x948   :  { %v1241_v16 = vrot.slane %v1240_v62, 2 }
 0x94a   :  { %v1242_v63 = vadd.f32 %v1241_v16, %v1240_v62 }
 0x94c   :  { %v1243_v0 = vrot.slane %v1242_v63, 1 }
 0x94e   :  { %v1244_v1 = vadd.f32 %v1243_v0, %v1242_v63 }
 0x950   :  { %v1245_v50 = vmul.f32 %v1244_v1, %v1195_v37 }
 0x952   :  { %v1246_v2 = vadd.f32 0.0001, %v1245_v50 }
 0x954   :  { %1617 = vrsqrt.f32 %v1246_v2  ;;  %vm1253_vm2 = vweird.f32 %v1246_v2 }
 0x95a   :  { %v1618_v3 = vpop.eup %1617 }
 0x95b   :  { %v1248_v4 = vmul.f32 %v1618_v3, %v1246_v2  ;;  %vm1254_vm15 = vweird.f32 %v1618_v3 }
 0x95c   :  { %vm1255_vm1 = vmor %vm1253_vm2, %vm1254_vm15 }
 0x95d   :  { %v1249_v5 = vmul.f32 %v1618_v3, %v1248_v4 }
 0x95f   :  { %v1250_v8 = vmul.f32 0.5, %v1249_v5 }
 0x961   :  { %v1251_v59 = vsub.f32 1.5, %v1250_v8 }
 0x963   :  { %v1252_v60 = vmul.f32 %v1618_v3, %v1251_v59 }
 0x965   :  { %v1256_v14 = vsel %vm1255_vm1, %v1618_v3, %v1252_v60 }
 0x966   :  { %v1257_v6 = vmul.f32 %v1256_v14, %v1197_v44  ;;  %v1258_v7 = vmul.f32 %v1256_v14, %v1198_v15  ;;  %v1259_v17 = vmul.f32 %v1256_v14, %v1199_v49  ;;  %v1260_v18 = vmul.f32 %v1256_v14, %v1200_v39 }
 0x968   :  { %v1265_v10 = vmul.f32 %v1563_v9, %v1257_v6  ;;  %v1266_v21 = vmul.f32 %v1563_v9, %v1258_v7  ;;  %v1267_v20 = vmul.f32 %v1563_v9, %v1259_v17  ;;  %v1268_v23 = vmul.f32 %v1563_v9, %v1260_v18 }
 0x96a   :  { %v1273_v26 = vadd.f32 %v1564_v19, %v1265_v10  ;;  %v1274_v27 = vadd.f32 %v1564_v19, %v1266_v21  ;;  %v1275_v24 = vadd.f32 %v1564_v19, %v1267_v20  ;;  %v1276_v28 = vadd.f32 %v1564_v19, %v1268_v23 }
 0x96c   :  { %v1277_v11 = vmax.f32 %v1273_v26, 0.0  ;;  %v1278_v29 = vmax.f32 %v1274_v27, 0.0  ;;  %v1279_v30 = vmax.f32 %v1275_v24, 0.0  ;;  %v1280_v13 = vmax.f32 %v1276_v28, 0.0 }
 0x96e   :  { %v1281_v31 = vsel %vm108_vm0, %v1277_v11, 0.0  ;;  %v1282_v33 = vsel %vm108_vm0, %v1278_v29, 0.0  ;;  %v1283_v34 = vsel %vm108_vm0, %v1279_v30, 0.0  ;;  %v1284_v35 = vsel %vm108_vm0, %v1280_v13, 0.0 }
 0x96f   :  { %1285 = vst [vmem:[%s2198_s20] sm:$0xff] %v1281_v31 }
 0x970   :  { %1286 = vst [vmem:[%s2198_s20 + $0x8] sm:$0xff] %v1282_v33 }
 0x971   :  { %1287 = vst [vmem:[%s2198_s20 + $0x10] sm:$0xff] %v1283_v34 }
 0x972   :  { %1288 = vst [vmem:[%s2198_s20 + $0x18] sm:$0xff] %v1284_v35 }

</bundles_post_ra>
